<compile_context>
chip_gen: v7x
topology: tpu7x:2x2x1
jax: 0.10.0
libtpu: 0.0.40
codegen_flags: <defaults>
</compile_context>

<pallas_src>
import functools

import jax
import jax.numpy as jnp
from jax.experimental import pallas as pl
from jax.experimental.pallas import tpu as pltpu

NEG_INF = -1e30
LANE = 128


# --------------------------------------------------------------------------
# kernel
# --------------------------------------------------------------------------
def _gat_layer(h_bf, mbias_ref, w_ref, onehot, b, *, col_s, col_d, col_one):
    """One GATConv layer (heads=1, inference).

    h_bf:      [N, Din_p]       bf16 node features (zero-padded)
    mbias_ref: [N, N]           bf16 Ref, additive mask (0 edge j->i / self loop, -1e30 else)
    w_ref:     [Din_p, Dout_p]  bf16 Ref. cols [0,dout): W^T; col_s: W^T a_src;
                                col_d: W^T a_dst; everything else zero.
    onehot:    [1, Dout_p]      f32, 1.0 at col_one, 0 elsewhere.
    b:         [1, Dout_p]      f32 bias (zero in padded columns).
    """
    # Features + both attention projections in a single MXU pass.
    hw = jnp.dot(h_bf, w_ref[...], preferred_element_type=jnp.float32)   # [N, Dout_p]
    s = hw[:, col_s:col_s + 1]                                           # [N,1]  hw·a_src
    d = hw[:, col_d:col_d + 1]                                           # [N,1]  hw·a_dst
    # Constant-1 lane so the aggregation matmul also emits the softmax row sums.
    hw_bf = (hw + onehot).astype(jnp.bfloat16)

    e = d + jnp.transpose(s)               # e[i,j] = d[i] + s[j]   (tiny [N,1]->[1,N] relayout)
    e = jnp.maximum(e, 0.2 * e)            # LeakyReLU(0.2) (slope < 1 => max form)
    e = e + mbias_ref[...]                 # bf16 mask; convert fuses into the add
    m = jnp.max(e, axis=-1, keepdims=True)  # finite: every row has a self loop
    p = jnp.exp(e - m)                     # masked entries underflow to exactly 0

    agg = jnp.dot(p.astype(jnp.bfloat16), hw_bf, preferred_element_type=jnp.float32)
    l = agg[:, col_one:col_one + 1]        # softmax denominator, straight off the MXU
    return agg * pl.reciprocal(l, approx=True) + b   # deferred softmax normalization


def resgat_kernel(x_ref, mbias_ref, onehot_ref,
                  w1_ref, b1_ref, w2_ref, b2_ref, w3_ref, b3_ref,
                  wfc_ref, bfc_ref, out_ref, *, col_s, col_d, col_one):
    oneh = onehot_ref[...]
    layer = functools.partial(_gat_layer, col_s=col_s, col_d=col_d, col_one=col_one)
    h = layer(x_ref[...], mbias_ref, w1_ref, oneh, b1_ref[...])
    h = layer(h.astype(jnp.bfloat16), mbias_ref, w2_ref, oneh, b2_ref[...])
    h = layer(h.astype(jnp.bfloat16), mbias_ref, w3_ref, oneh, b3_ref[...])
    out = jnp.dot(h.astype(jnp.bfloat16), wfc_ref[...],
                  preferred_element_type=jnp.float32) + bfc_ref[...]
    out_ref[...] = out.astype(out_ref.dtype)


# --------------------------------------------------------------------------
# wrapper
# --------------------------------------------------------------------------
def _round_up(x, m):
    return (x + m - 1) // m * m


def _pad2d(a, rows, cols):
    return jnp.pad(a, ((0, rows - a.shape[0]), (0, cols - a.shape[1])))


def build_mask_bias(edge_index, n_pad):
    """[n_pad, n_pad] bf16 additive mask: 0 where edge src->dst (or self loop), -1e30 else.

    Self loops are added on ALL rows (including padded nodes) so every softmax
    row has a finite max -> masked entries underflow to 0 and no NaNs appear.
    """
    src, dst = edge_index[0], edge_index[1]
    adj = jnp.zeros((n_pad, n_pad), jnp.float32).at[dst, src].set(1.0)
    idx = jnp.arange(n_pad)
    adj = adj.at[idx, idx].set(1.0)
    return jnp.where(adj > 0, 0.0, NEG_INF).astype(jnp.bfloat16)


def _glorot(key, shape):
    fan_in = shape[-1]
    fan_out = shape[-2] if len(shape) > 1 else shape[-1]
    limit = jnp.sqrt(6.0 / (fan_in + fan_out))
    return jax.random.uniform(key, shape, jnp.float32, -limit, limit)


def init_params(key, in_dim, hid_dim, out_dim):
    keys = jax.random.split(key, 16)
    params = {}
    dims = [(in_dim, hid_dim), (hid_dim, hid_dim), (hid_dim, hid_dim)]
    for li, (din, dout) in enumerate(dims):
        k = keys[4 * li: 4 * li + 4]
        params[f"gat{li + 1}"] = dict(
            w=_glorot(k[0], (dout, din)),         # GATConv.lin.weight
            a_src=_glorot(k[1], (1, dout)),       # att_src (heads=1)
            a_dst=_glorot(k[2], (1, dout)),       # att_dst (heads=1)
            b=jnp.zeros((1, dout), jnp.float32),  # GATConv.bias (zeros init)
        )
    params["fc"] = dict(
        w=_glorot(keys[12], (out_dim, hid_dim)),
        b=jax.random.uniform(keys[13], (1, out_dim), jnp.float32,
                             -1.0 / jnp.sqrt(hid_dim), 1.0 / jnp.sqrt(hid_dim)),
    )
    return params


def ajw_resgat_forward(x, edge_index, params):
    n, in_dim = x.shape
    hid_dim = params["gat1"]["b"].shape[-1]
    out_dim = params["fc"]["b"].shape[-1]

    # Node dim padded to the LANE (128) so the dominant [N,N] work is lane-dense
    # (also covers bf16 16-row sublane packing); feature dims padded to LANE with
    # 3 spare lanes reserved for the folded a_src / a_dst projections and the
    # constant-1 row-sum column.
    n_p = _round_up(n, LANE)
    in_p = _round_up(in_dim, LANE)
    hid_p = _round_up(hid_dim + 3, LANE)
    out_p = _round_up(out_dim, LANE)
    col_s, col_d, col_one = hid_dim, hid_dim + 1, hid_dim + 2

    x_p = _pad2d(x.astype(jnp.bfloat16), n_p, in_p)      # bf16 end-to-end
    mbias = build_mask_bias(edge_index, n_p)             # bf16 additive mask
    onehot = jnp.zeros((1, hid_p), jnp.float32).at[0, col_one].set(1.0)

    args = [x_p, mbias, onehot]
    layer_dims = [(in_dim, in_p), (hid_dim, hid_p), (hid_dim, hid_p)]
    for name, (din, din_p) in zip(("gat1", "gat2", "gat3"), layer_dims):
        p = params[name]
        w_t = p["w"].T.astype(jnp.float32)                # [din, hid_dim]
        c_src = w_t @ p["a_src"].T                        # [din, 1]
        c_dst = w_t @ p["a_dst"].T                        # [din, 1]
        # Contamination-safe by construction: only rows [:din] are non-zero, so
        # the previous layer's auxiliary columns (s, d, ~1) multiply zero rows.
        w_aug = jnp.zeros((din_p, hid_p), jnp.float32)
        w_aug = w_aug.at[:din, :hid_dim].set(w_t)
        w_aug = w_aug.at[:din, col_s].set(c_src[:, 0])
        w_aug = w_aug.at[:din, col_d].set(c_dst[:, 0])
        b = _pad2d(p["b"].astype(jnp.float32), 1, hid_p)  # f32, zero in padded cols
        args += [w_aug.astype(jnp.bfloat16), b]
    wfc = _pad2d(params["fc"]["w"].T.astype(jnp.float32), hid_p, out_p).astype(jnp.bfloat16)
    bfc = _pad2d(params["fc"]["b"].astype(jnp.float32), 1, out_p)
    args += [wfc, bfc]

    # Advisory cost estimate so XLA schedules the surrounding scatter/pads sensibly.
    flops = 0
    for _, din_p in layer_dims:
        flops += 2 * n_p * din_p * hid_p     # hw = h @ W_aug (projections folded in)
        flops += 2 * n_p * n_p * hid_p       # aggregation p @ hw (row sums folded in)
        flops += 6 * n_p * n_p               # leaky / mask add / max / sub
    flops += 2 * n_p * hid_p * out_p         # fc
    transcendentals = 3 * n_p * n_p + 3 * n_p
    bytes_accessed = sum(int(a.size) * a.dtype.itemsize for a in args) + n_p * out_p * 4

    kernel = functools.partial(resgat_kernel, col_s=col_s, col_d=col_d, col_one=col_one)
    vmem_spec = pl.BlockSpec(memory_space=pltpu.MemorySpace.VMEM)
    out_full = pl.pallas_call(
        kernel,
        out_shape=jax.ShapeDtypeStruct((n_p, out_p), jnp.float32),
        in_specs=[vmem_spec] * len(args),
        out_specs=vmem_spec,
        # 32 MiB is within every generation's scoped/physical VMEM (incl. v7x 64 MiB).
        compiler_params=pltpu.CompilerParams(vmem_limit_bytes=32 * 1024 * 1024),
        cost_estimate=pl.CostEstimate(flops=int(flops),
                                      transcendentals=int(transcendentals),
                                      bytes_accessed=int(bytes_accessed)),
    )(*args)
    return out_full[:n, :out_dim]


# --------------------------------------------------------------------------
# pure-JAX reference & test
# --------------------------------------------------------------------------
def reference_forward(x, edge_index, params):
    """Pure-JAX f32 reference (standard GATConv math, no padding / bf16)."""
    n = x.shape[0]
    src, dst = edge_index[0], edge_index[1]
    adj = jnp.zeros((n, n), jnp.float32).at[dst, src].set(1.0)
    idx = jnp.arange(n)
    adj = adj.at[idx, idx].set(1.0)

    h = x.astype(jnp.float32)
    for name in ("gat1", "gat2", "gat3"):
        p = params[name]
        hw = h @ p["w"].T
        s = jnp.sum(hw * p["a_src"], axis=-1, keepdims=True)
        d = jnp.sum(hw * p["a_dst"], axis=-1, keepdims=True)
        e = d + s.T
        e = jnp.where(e > 0, e, 0.2 * e)
        e = jnp.where(adj > 0, e, NEG_INF)
        e = e - jnp.max(e, axis=-1, keepdims=True)
        pnum = jnp.exp(e) * adj
        alpha = pnum / jnp.sum(pnum, axis=-1, keepdims=True)
        h = alpha @ hw + p["b"]
    return h @ params["fc"]["w"].T + params["fc"]["b"]


if __name__ == "__main__":
    N, E = 16, 40
    in_dim, hid_dim, out_dim = 8, 32, 4

    key = jax.random.PRNGKey(0)
    kx, ks, kd, kp = jax.random.split(key, 4)
    x = jax.random.normal(kx, (N, in_dim), jnp.float32)
    src = jax.random.randint(ks, (E,), 0, N)
    dst = jax.random.randint(kd, (E,), 0, N)
    edge_index = jnp.stack([src, dst])        # [2, E], row 0 = source, row 1 = target

    params = init_params(kp, in_dim, hid_dim, out_dim)

    out = ajw_resgat_forward(x, edge_index, params)
    out = jax.block_until_ready(out)

    ref = reference_forward(x, edge_index, params)
    assert out.shape == (N, out_dim)
    # tolerance covers bf16 MXU operands, bf16 mask bias, folded bf16 attention
    # projections, and the approx reciprocal
    assert jnp.allclose(out, ref, atol=6e-2, rtol=6e-2), "mismatch vs pure-JAX reference"

    print("KERNEL_OK")
</pallas_src>

<mosaic_0001>
module attributes {stable_mosaic.version = 11 : i64} {
  func.func @resgat_kernel(%arg0: memref<128x128xbf16, #tpu.memory_space<vmem>>, %arg1: memref<128x128xbf16, #tpu.memory_space<vmem>>, %arg2: memref<1x128xf32, #tpu.memory_space<vmem>>, %arg3: memref<128x128xbf16, #tpu.memory_space<vmem>>, %arg4: memref<1x128xf32, #tpu.memory_space<vmem>>, %arg5: memref<128x128xbf16, #tpu.memory_space<vmem>>, %arg6: memref<1x128xf32, #tpu.memory_space<vmem>>, %arg7: memref<128x128xbf16, #tpu.memory_space<vmem>>, %arg8: memref<1x128xf32, #tpu.memory_space<vmem>>, %arg9: memref<128x128xbf16, #tpu.memory_space<vmem>>, %arg10: memref<1x128xf32, #tpu.memory_space<vmem>>, %arg11: memref<128x128xf32, #tpu.memory_space<vmem>>) attributes {dimension_semantics = [], scalar_prefetch = 0 : i64, scratch_operands = 0 : i64, tpu.core_type = #tpu.core_type<tc>} {
    %c0 = arith.constant 0 : index
    %c0_0 = arith.constant 0 : index
    %0 = vector.load %arg2[%c0, %c0_0] : memref<1x128xf32, #tpu.memory_space<vmem>>, vector<1x128xf32>
    %c0_1 = arith.constant 0 : index
    %c0_2 = arith.constant 0 : index
    %1 = vector.load %arg0[%c0_1, %c0_2] : memref<128x128xbf16, #tpu.memory_space<vmem>>, vector<128x128xbf16>
    %c0_3 = arith.constant 0 : index
    %c0_4 = arith.constant 0 : index
    %2 = vector.load %arg4[%c0_3, %c0_4] : memref<1x128xf32, #tpu.memory_space<vmem>>, vector<1x128xf32>
    %c0_5 = arith.constant 0 : index
    %c0_6 = arith.constant 0 : index
    %3 = vector.load %arg3[%c0_5, %c0_6] : memref<128x128xbf16, #tpu.memory_space<vmem>>, vector<128x128xbf16>
    %cst = arith.constant dense<0.000000e+00> : vector<128x128xf32>
    %4 = tpu.matmul %1, %3, %cst {dimension_numbers = #tpu.dot_dimension_numbers<[1], [0], [0], [1], [0, 0, 1, 1], [], []>} : vector<128x128xbf16>, vector<128x128xbf16>, vector<128x128xf32> -> vector<128x128xf32>
    %5 = vector.extract_strided_slice %4 {offsets = [0, 32], sizes = [128, 1], strides = [1, 1]} : vector<128x128xf32> to vector<128x1xf32>
    %6 = vector.extract_strided_slice %4 {offsets = [0, 33], sizes = [128, 1], strides = [1, 1]} : vector<128x128xf32> to vector<128x1xf32>
    %7 = vector.broadcast %0 : vector<1x128xf32> to vector<128x128xf32>
    %8 = arith.addf %4, %7 : vector<128x128xf32>
    %9 = arith.truncf %8 : vector<128x128xf32> to vector<128x128xbf16>
    %10 = tpu.transpose %5, [1, 0] : vector<128x1xf32> -> vector<1x128xf32>
    %11 = vector.broadcast %6 : vector<128x1xf32> to vector<128x128xf32>
    %12 = vector.broadcast %10 : vector<1x128xf32> to vector<128x128xf32>
    %13 = arith.addf %11, %12 : vector<128x128xf32>
    %cst_7 = arith.constant 2.000000e-01 : f32
    %14 = vector.broadcast %cst_7 : f32 to vector<128x128xf32>
    %15 = arith.mulf %14, %13 : vector<128x128xf32>
    %16 = arith.maximumf %13, %15 : vector<128x128xf32>
    %c0_8 = arith.constant 0 : index
    %c0_9 = arith.constant 0 : index
    %17 = vector.load %arg1[%c0_8, %c0_9] : memref<128x128xbf16, #tpu.memory_space<vmem>>, vector<128x128xbf16>
    %18 = arith.extf %17 : vector<128x128xbf16> to vector<128x128xf32>
    %19 = arith.addf %16, %18 : vector<128x128xf32>
    %cst_10 = arith.constant dense<0xFF800000> : vector<128xf32>
    %20 = vector.multi_reduction <maximumf>, %19, %cst_10 [1] : vector<128x128xf32> to vector<128xf32>
    %21 = vector.shape_cast %20 : vector<128xf32> to vector<128x1xf32>
    %22 = vector.broadcast %21 : vector<128x1xf32> to vector<128x128xf32>
    %23 = arith.subf %19, %22 : vector<128x128xf32>
    %24 = math.exp %23 : vector<128x128xf32>
    %25 = arith.truncf %24 : vector<128x128xf32> to vector<128x128xbf16>
    %cst_11 = arith.constant dense<0.000000e+00> : vector<128x128xf32>
    %26 = tpu.matmul %25, %9, %cst_11 {dimension_numbers = #tpu.dot_dimension_numbers<[1], [0], [0], [1], [0, 0, 1, 1], [], []>} : vector<128x128xbf16>, vector<128x128xbf16>, vector<128x128xf32> -> vector<128x128xf32>
    %27 = vector.extract_strided_slice %26 {offsets = [0, 34], sizes = [128, 1], strides = [1, 1]} : vector<128x128xf32> to vector<128x1xf32>
    %28 = tpu.reciprocal %27 {approx = true} : vector<128x1xf32> -> vector<128x1xf32>
    %29 = vector.broadcast %28 : vector<128x1xf32> to vector<128x128xf32>
    %30 = arith.mulf %26, %29 : vector<128x128xf32>
    %31 = vector.broadcast %2 : vector<1x128xf32> to vector<128x128xf32>
    %32 = arith.addf %30, %31 : vector<128x128xf32>
    %33 = arith.truncf %32 : vector<128x128xf32> to vector<128x128xbf16>
    %c0_12 = arith.constant 0 : index
    %c0_13 = arith.constant 0 : index
    %34 = vector.load %arg6[%c0_12, %c0_13] : memref<1x128xf32, #tpu.memory_space<vmem>>, vector<1x128xf32>
    %c0_14 = arith.constant 0 : index
    %c0_15 = arith.constant 0 : index
    %35 = vector.load %arg5[%c0_14, %c0_15] : memref<128x128xbf16, #tpu.memory_space<vmem>>, vector<128x128xbf16>
    %cst_16 = arith.constant dense<0.000000e+00> : vector<128x128xf32>
    %36 = tpu.matmul %33, %35, %cst_16 {dimension_numbers = #tpu.dot_dimension_numbers<[1], [0], [0], [1], [0, 0, 1, 1], [], []>} : vector<128x128xbf16>, vector<128x128xbf16>, vector<128x128xf32> -> vector<128x128xf32>
    %37 = vector.extract_strided_slice %36 {offsets = [0, 32], sizes = [128, 1], strides = [1, 1]} : vector<128x128xf32> to vector<128x1xf32>
    %38 = vector.extract_strided_slice %36 {offsets = [0, 33], sizes = [128, 1], strides = [1, 1]} : vector<128x128xf32> to vector<128x1xf32>
    %39 = vector.broadcast %0 : vector<1x128xf32> to vector<128x128xf32>
    %40 = arith.addf %36, %39 : vector<128x128xf32>
    %41 = arith.truncf %40 : vector<128x128xf32> to vector<128x128xbf16>
    %42 = tpu.transpose %37, [1, 0] : vector<128x1xf32> -> vector<1x128xf32>
    %43 = vector.broadcast %38 : vector<128x1xf32> to vector<128x128xf32>
    %44 = vector.broadcast %42 : vector<1x128xf32> to vector<128x128xf32>
    %45 = arith.addf %43, %44 : vector<128x128xf32>
    %cst_17 = arith.constant 2.000000e-01 : f32
    %46 = vector.broadcast %cst_17 : f32 to vector<128x128xf32>
    %47 = arith.mulf %46, %45 : vector<128x128xf32>
    %48 = arith.maximumf %45, %47 : vector<128x128xf32>
    %c0_18 = arith.constant 0 : index
    %c0_19 = arith.constant 0 : index
    %49 = vector.load %arg1[%c0_18, %c0_19] : memref<128x128xbf16, #tpu.memory_space<vmem>>, vector<128x128xbf16>
    %50 = arith.extf %49 : vector<128x128xbf16> to vector<128x128xf32>
    %51 = arith.addf %48, %50 : vector<128x128xf32>
    %cst_20 = arith.constant dense<0xFF800000> : vector<128xf32>
    %52 = vector.multi_reduction <maximumf>, %51, %cst_20 [1] : vector<128x128xf32> to vector<128xf32>
    %53 = vector.shape_cast %52 : vector<128xf32> to vector<128x1xf32>
    %54 = vector.broadcast %53 : vector<128x1xf32> to vector<128x128xf32>
    %55 = arith.subf %51, %54 : vector<128x128xf32>
    %56 = math.exp %55 : vector<128x128xf32>
    %57 = arith.truncf %56 : vector<128x128xf32> to vector<128x128xbf16>
    %cst_21 = arith.constant dense<0.000000e+00> : vector<128x128xf32>
    %58 = tpu.matmul %57, %41, %cst_21 {dimension_numbers = #tpu.dot_dimension_numbers<[1], [0], [0], [1], [0, 0, 1, 1], [], []>} : vector<128x128xbf16>, vector<128x128xbf16>, vector<128x128xf32> -> vector<128x128xf32>
    %59 = vector.extract_strided_slice %58 {offsets = [0, 34], sizes = [128, 1], strides = [1, 1]} : vector<128x128xf32> to vector<128x1xf32>
    %60 = tpu.reciprocal %59 {approx = true} : vector<128x1xf32> -> vector<128x1xf32>
    %61 = vector.broadcast %60 : vector<128x1xf32> to vector<128x128xf32>
    %62 = arith.mulf %58, %61 : vector<128x128xf32>
    %63 = vector.broadcast %34 : vector<1x128xf32> to vector<128x128xf32>
    %64 = arith.addf %62, %63 : vector<128x128xf32>
    %65 = arith.truncf %64 : vector<128x128xf32> to vector<128x128xbf16>
    %c0_22 = arith.constant 0 : index
    %c0_23 = arith.constant 0 : index
    %66 = vector.load %arg8[%c0_22, %c0_23] : memref<1x128xf32, #tpu.memory_space<vmem>>, vector<1x128xf32>
    %c0_24 = arith.constant 0 : index
    %c0_25 = arith.constant 0 : index
    %67 = vector.load %arg7[%c0_24, %c0_25] : memref<128x128xbf16, #tpu.memory_space<vmem>>, vector<128x128xbf16>
    %cst_26 = arith.constant dense<0.000000e+00> : vector<128x128xf32>
    %68 = tpu.matmul %65, %67, %cst_26 {dimension_numbers = #tpu.dot_dimension_numbers<[1], [0], [0], [1], [0, 0, 1, 1], [], []>} : vector<128x128xbf16>, vector<128x128xbf16>, vector<128x128xf32> -> vector<128x128xf32>
    %69 = vector.extract_strided_slice %68 {offsets = [0, 32], sizes = [128, 1], strides = [1, 1]} : vector<128x128xf32> to vector<128x1xf32>
    %70 = vector.extract_strided_slice %68 {offsets = [0, 33], sizes = [128, 1], strides = [1, 1]} : vector<128x128xf32> to vector<128x1xf32>
    %71 = vector.broadcast %0 : vector<1x128xf32> to vector<128x128xf32>
    %72 = arith.addf %68, %71 : vector<128x128xf32>
    %73 = arith.truncf %72 : vector<128x128xf32> to vector<128x128xbf16>
    %74 = tpu.transpose %69, [1, 0] : vector<128x1xf32> -> vector<1x128xf32>
    %75 = vector.broadcast %70 : vector<128x1xf32> to vector<128x128xf32>
    %76 = vector.broadcast %74 : vector<1x128xf32> to vector<128x128xf32>
    %77 = arith.addf %75, %76 : vector<128x128xf32>
    %cst_27 = arith.constant 2.000000e-01 : f32
    %78 = vector.broadcast %cst_27 : f32 to vector<128x128xf32>
    %79 = arith.mulf %78, %77 : vector<128x128xf32>
    %80 = arith.maximumf %77, %79 : vector<128x128xf32>
    %c0_28 = arith.constant 0 : index
    %c0_29 = arith.constant 0 : index
    %81 = vector.load %arg1[%c0_28, %c0_29] : memref<128x128xbf16, #tpu.memory_space<vmem>>, vector<128x128xbf16>
    %82 = arith.extf %81 : vector<128x128xbf16> to vector<128x128xf32>
    %83 = arith.addf %80, %82 : vector<128x128xf32>
    %cst_30 = arith.constant dense<0xFF800000> : vector<128xf32>
    %84 = vector.multi_reduction <maximumf>, %83, %cst_30 [1] : vector<128x128xf32> to vector<128xf32>
    %85 = vector.shape_cast %84 : vector<128xf32> to vector<128x1xf32>
    %86 = vector.broadcast %85 : vector<128x1xf32> to vector<128x128xf32>
    %87 = arith.subf %83, %86 : vector<128x128xf32>
    %88 = math.exp %87 : vector<128x128xf32>
    %89 = arith.truncf %88 : vector<128x128xf32> to vector<128x128xbf16>
    %cst_31 = arith.constant dense<0.000000e+00> : vector<128x128xf32>
    %90 = tpu.matmul %89, %73, %cst_31 {dimension_numbers = #tpu.dot_dimension_numbers<[1], [0], [0], [1], [0, 0, 1, 1], [], []>} : vector<128x128xbf16>, vector<128x128xbf16>, vector<128x128xf32> -> vector<128x128xf32>
    %91 = vector.extract_strided_slice %90 {offsets = [0, 34], sizes = [128, 1], strides = [1, 1]} : vector<128x128xf32> to vector<128x1xf32>
    %92 = tpu.reciprocal %91 {approx = true} : vector<128x1xf32> -> vector<128x1xf32>
    %93 = vector.broadcast %92 : vector<128x1xf32> to vector<128x128xf32>
    %94 = arith.mulf %90, %93 : vector<128x128xf32>
    %95 = vector.broadcast %66 : vector<1x128xf32> to vector<128x128xf32>
    %96 = arith.addf %94, %95 : vector<128x128xf32>
    %97 = arith.truncf %96 : vector<128x128xf32> to vector<128x128xbf16>
    %c0_32 = arith.constant 0 : index
    %c0_33 = arith.constant 0 : index
    %98 = vector.load %arg9[%c0_32, %c0_33] : memref<128x128xbf16, #tpu.memory_space<vmem>>, vector<128x128xbf16>
    %cst_34 = arith.constant dense<0.000000e+00> : vector<128x128xf32>
    %99 = tpu.matmul %97, %98, %cst_34 {dimension_numbers = #tpu.dot_dimension_numbers<[1], [0], [0], [1], [0, 0, 1, 1], [], []>} : vector<128x128xbf16>, vector<128x128xbf16>, vector<128x128xf32> -> vector<128x128xf32>
    %c0_35 = arith.constant 0 : index
    %c0_36 = arith.constant 0 : index
    %100 = vector.load %arg10[%c0_35, %c0_36] : memref<1x128xf32, #tpu.memory_space<vmem>>, vector<1x128xf32>
    %101 = vector.broadcast %100 : vector<1x128xf32> to vector<128x128xf32>
    %102 = arith.addf %99, %101 : vector<128x128xf32>
    %c0_37 = arith.constant 0 : index
    %c0_38 = arith.constant 0 : index
    %103 = vector.load %arg11[%c0_37, %c0_38] : memref<128x128xf32, #tpu.memory_space<vmem>>, vector<128x128xf32>
    tpu.vector_store %arg11[%c0_37, %c0_38], %102 {strides = array<i32>} : memref<128x128xf32, #tpu.memory_space<vmem>>, vector<128x128xf32>,
    return
  }
}

</mosaic_0001>

<bundles_post_ra>
// kernel: tpu_custom_call.1
= control target key start
LH: loop header
LB: loop body
LE: loop exit
PB: predicated region body
PF: predicated region fallthrough
CT: control target
= control target key end

     0   :  { %16 = vsyncpa [#allocation3], 0  ;;  %s4418_s0 = inlined_call_operand.hbm [shape: bf16[128,128], index: 0, kind: input, shape index: {}]   ;;  %s4419_s1 = inlined_call_operand.hbm [shape: bf16[128,128], index: 1, kind: input, shape index: {}]   ;;  %s4420_s2 = inlined_call_operand.vmem [shape: f32[1,128], index: 2, kind: input, shape index: {}]   ;;  %s4421_s3 = inlined_call_operand.hbm [shape: bf16[128,128], index: 3, kind: input, shape index: {}]   ;;  %s4422_s4 = inlined_call_operand.vmem [shape: f32[1,128], index: 4, kind: input, shape index: {}]   ;;  %s4423_s5 = inlined_call_operand.hbm [shape: bf16[128,128], index: 5, kind: input, shape index: {}]   ;;  %s4424_s6 = inlined_call_operand.vmem [shape: f32[1,128], index: 6, kind: input, shape index: {}]   ;;  %s4425_s7 = inlined_call_operand.hbm [shape: bf16[128,128], index: 7, kind: input, shape index: {}]   ;;  %s4426_s8 = inlined_call_operand.vmem [shape: f32[1,128], index: 8, kind: input, shape index: {}]   ;;  %s4427_s9 = inlined_call_operand.hbm [shape: bf16[128,128], index: 9, kind: input, shape index: {}]   ;;  %s4428_s10 = inlined_call_operand.vmem [shape: f32[1,128], index: 10, kind: input, shape index: {}]   ;;  %s4429_s11 = inlined_call_operand.hbm [shape: f32[128,128], index: 11, kind: output, shape index: {}]  }
   0x1   :  { %17 = vsyncpa [#allocation6], 0 }
   0x2   :  { %18 = vsyncpa [#allocation9], 0 }
   0x3   :  { %19 = vsyncpa [#allocation12], 0 }
   0x4   :  { %20 = vsyncpa [#allocation4], 0  ;;  %s3512_s17 = smov [#allocation5]   ;;  %s3513_s19 = smov [#allocation8]  }
   0x5   :  { %s38_s18 = sshll.u32 %s3512_s17, 4  ;;  %s66_s20 = sshll.u32 %s3513_s19, 4  ;;  %s39_s18 = int_to_ptr.vmem [resolvable:$true] %s38_s18  ;;  %s3586_s20 = int_to_ptr.vmem [resolvable:$true] %s66_s20 }
   0x6   :  { %s3348_s23 = scalar_lea.hbm %s4419_s1, 1024 }
   0x7   :  { %p3349_p0 = scmp.ne.s32.totalorder %s4419_s1, %s3348_s23  ;;  %p3352_p1 = scmp.lt.u32.totalorder %s3348_s23, %s4419_s1 }
   0x9   :  { %p3354_p2 = pnand %p3352_p1, %p3349_p0 }
   0xb   :  { %3357 = shalt.err (!%p3354_p2)
}
   0xc   :  { %s3358_s28 = scalar_lea.vmem %s39_s18, 1024  ;;  %p3363_p4 = scmp.lt.s32.totalorder %s39_s18, %s39_s18 }
   0xd   :  { %p3359_p3 = scmp.ne.s32.totalorder %s39_s18, %s3358_s28  ;;  %p3364_p5 = scmp.lt.s32.totalorder %s3358_s28, %s3358_s28 }
   0xf   :  { %p3365_p6 = por %p3364_p5, %p3363_p4 }
  0x11   :  { %p3366_p7 = pnand %p3365_p6, %p3359_p3 }
  0x13   :  { %3369 = shalt.err (!%p3366_p7)
}
  0x14   :  { %s3514_s29 = smov 64   ;;  %s3515_s30 = smov 4  }
  0x15   :  { %44 = dma.hbm_to_vmem [thread:$0]  %s4419_s1, 1024, %s39_s18, [#allocation6], %s3514_s29, %s3514_s29, %s3515_s30  }
  0x16   :  { %s3370_s16 = scalar_lea.hbm %s4423_s5, 1024 }
  0x17   :  { %p3371_p8 = scmp.ne.s32.totalorder %s4423_s5, %s3370_s16  ;;  %p3374_p9 = scmp.lt.u32.totalorder %s3370_s16, %s4423_s5 }
  0x19   :  { %p3376_p10 = pnand %p3374_p9, %p3371_p8 }
  0x1b   :  { %3379 = shalt.err (!%p3376_p10)
}
  0x1c   :  { %s3380_s23 = scalar_lea.vmem %s3586_s20, 1024  ;;  %p3385_p12 = scmp.lt.s32.totalorder %s3586_s20, %s3586_s20 }
  0x1d   :  { %p3381_p11 = scmp.ne.s32.totalorder %s3586_s20, %s3380_s23  ;;  %p3386_p13 = scmp.lt.s32.totalorder %s3380_s23, %s3380_s23 }
  0x1f   :  { %p3387_p0 = por %p3386_p13, %p3385_p12 }
  0x21   :  { %p3388_p1 = pnand %p3387_p0, %p3381_p11 }
  0x23   :  { %3391 = shalt.err (!%p3388_p1)
}
  0x24   :  { %72 = dma.hbm_to_vmem [thread:$0]  %s4423_s5, 1024, %s3586_s20, [#allocation9], %s3514_s29, %s3514_s29, %s3515_s30  }
  0x25   :  { %s3516_s24 = smov [#allocation2]   ;;  %s3517_s26 = smov [#allocation7]  }
  0x26   :  { %s26_s25 = sshll.u32 %s3516_s24, 4  ;;  %s52_s27 = sshll.u32 %s3517_s26, 4  ;;  %s27_s25 = int_to_ptr.vmem [resolvable:$true] %s26_s25  ;;  %s3623_s27 = int_to_ptr.vmem [resolvable:$true] %s52_s27 }
  0x27   :  { %s3392_s13 = scalar_lea.hbm %s4418_s0, 1024 }
  0x28   :  { %p3393_p2 = scmp.ne.s32.totalorder %s4418_s0, %s3392_s13  ;;  %p3396_p3 = scmp.lt.u32.totalorder %s3392_s13, %s4418_s0 }
  0x2a   :  { %p3398_p4 = pnand %p3396_p3, %p3393_p2 }
  0x2c   :  { %3401 = shalt.err (!%p3398_p4)
}
  0x2d   :  { %s3402_s5 = scalar_lea.vmem %s27_s25, 1024  ;;  %p3407_p6 = scmp.lt.s32.totalorder %s27_s25, %s27_s25 }
  0x2e   :  { %p3403_p5 = scmp.ne.s32.totalorder %s27_s25, %s3402_s5  ;;  %p3408_p7 = scmp.lt.s32.totalorder %s3402_s5, %s3402_s5 }
  0x30   :  { %p3409_p8 = por %p3408_p7, %p3407_p6 }
  0x32   :  { %p3410_p9 = pnand %p3409_p8, %p3403_p5 }
  0x34   :  { %3413 = shalt.err (!%p3410_p9)
}
  0x35   :  { %32 = dma.hbm_to_vmem [thread:$0]  %s4418_s0, 1024, %s27_s25, [#allocation3], %s3514_s29, %s3514_s29, %s3515_s30  }
  0x36   :  { %s3414_s23 = scalar_lea.hbm %s4421_s3, 1024 }
  0x37   :  { %p3415_p10 = scmp.ne.s32.totalorder %s4421_s3, %s3414_s23  ;;  %p3418_p11 = scmp.lt.u32.totalorder %s3414_s23, %s4421_s3 }
  0x39   :  { %p3420_p12 = pnand %p3418_p11, %p3415_p10 }
  0x3b   :  { %3423 = shalt.err (!%p3420_p12)
}
  0x3c   :  { %s3424_s28 = scalar_lea.vmem %s3623_s27, 1024  ;;  %p3429_p0 = scmp.lt.s32.totalorder %s3623_s27, %s3623_s27 }
  0x3d   :  { %p3425_p13 = scmp.ne.s32.totalorder %s3623_s27, %s3424_s28  ;;  %p3430_p1 = scmp.lt.s32.totalorder %s3424_s28, %s3424_s28 }
  0x3f   :  { %p3431_p2 = por %p3430_p1, %p3429_p0 }
  0x41   :  { %p3432_p3 = pnand %p3431_p2, %p3425_p13 }
  0x43   :  { %3435 = shalt.err (!%p3432_p3)
}
  0x44   :  { %58 = dma.hbm_to_vmem [thread:$0]  %s4421_s3, 1024, %s3623_s27, [#allocation6], %s3514_s29, %s3514_s29, %s3515_s30  }
  0x45   :  { %s3518_s12 = smov [#allocation10]   ;;  %s3519_s14 = smov [#allocation11]  }
  0x46   :  { %s80_s13 = sshll.u32 %s3518_s12, 4  ;;  %s94_s15 = sshll.u32 %s3519_s14, 4  ;;  %s81_s13 = int_to_ptr.vmem [resolvable:$true] %s80_s13  ;;  %s3660_s15 = int_to_ptr.vmem [resolvable:$true] %s94_s15 }
  0x47   :  { %s3436_s5 = scalar_lea.hbm %s4425_s7, 1024 }
  0x48   :  { %p3437_p4 = scmp.ne.s32.totalorder %s4425_s7, %s3436_s5  ;;  %p3440_p5 = scmp.lt.u32.totalorder %s3436_s5, %s4425_s7 }
  0x4a   :  { %p3442_p6 = pnand %p3440_p5, %p3437_p4 }
  0x4c   :  { %3445 = shalt.err (!%p3442_p6)
}
  0x4d   :  { %s3446_s3 = scalar_lea.vmem %s81_s13, 1024  ;;  %p3451_p8 = scmp.lt.s32.totalorder %s81_s13, %s81_s13 }
  0x4e   :  { %p3447_p7 = scmp.ne.s32.totalorder %s81_s13, %s3446_s3  ;;  %p3452_p9 = scmp.lt.s32.totalorder %s3446_s3, %s3446_s3 }
  0x50   :  { %p3453_p10 = por %p3452_p9, %p3451_p8 }
  0x52   :  { %p3454_p11 = pnand %p3453_p10, %p3447_p7 }
  0x54   :  { %3457 = shalt.err (!%p3454_p11)
}
  0x55   :  { %86 = dma.hbm_to_vmem [thread:$0]  %s4425_s7, 1024, %s81_s13, [#allocation9], %s3514_s29, %s3514_s29, %s3515_s30  }
  0x56   :  { %s3458_s24 = scalar_lea.hbm %s4427_s9, 1024 }
  0x57   :  { %p3459_p12 = scmp.ne.s32.totalorder %s4427_s9, %s3458_s24  ;;  %p3462_p13 = scmp.lt.u32.totalorder %s3458_s24, %s4427_s9 }
  0x59   :  { %p3464_p0 = pnand %p3462_p13, %p3459_p12 }
  0x5b   :  { %3467 = shalt.err (!%p3464_p0)
}
  0x5c   :  { %s3468_s12 = scalar_lea.vmem %s3660_s15, 1024  ;;  %p3473_p2 = scmp.lt.s32.totalorder %s3660_s15, %s3660_s15 }
  0x5d   :  { %p3469_p1 = scmp.ne.s32.totalorder %s3660_s15, %s3468_s12  ;;  %p3474_p3 = scmp.lt.s32.totalorder %s3468_s12, %s3468_s12 }
  0x5f   :  { %p3475_p4 = por %p3474_p3, %p3473_p2 }
  0x61   :  { %p3476_p5 = pnand %p3475_p4, %p3469_p1 }
  0x63   :  { %3479 = shalt.err (!%p3476_p5)
}
  0x64   :  { %100 = dma.hbm_to_vmem [thread:$0]  %s4427_s9, 1024, %s3660_s15, [#allocation12], %s3514_s29, %s3514_s29, %s3515_s30  }
  0x65   :  { %3502 = dma.done.wait [#allocation3], 1024  }
  0x66   :  { %3503 = vsyncadd [#allocation3], 4294966272 }
  0x67   :  { %3504 = dma.done.wait [#allocation6], 2048  }
  0x68   :  { %3505 = vsyncadd [#allocation6], 4294965248 }
  0x69   :  { %3506 = dma.done.wait [#allocation9], 2048  }
  0x6a   :  { %3507 = vsyncadd [#allocation9], 4294965248 }
  0x6b   :  { %3508 = dma.done.wait [#allocation12], 1024  }
  0x6c   :  { %3509 = vsyncadd [#allocation12], 4294966272  ;;  %v3114_v0 = vld [vmem:[#allocation7] sm:$0xff]   ;;  %v3115_v1 = vld [vmem:[#allocation7 + $0x8] sm:$0xff]   ;;  %v3520_v16 = vmov 33   ;;  %s3521_s30 = smov 96  }
  0x6d   :  { %2848 = vmatprep.subr.bf16.mxu0 %v3114_v0  ;;  %v3116_v2 = vld [vmem:[#allocation7 + $0x10] sm:$0xff]   ;;  %v3117_v3 = vld [vmem:[#allocation7 + $0x18] sm:$0xff]   ;;  %v3122_v4 = vld [vmem:[#allocation2] sm:$0xff]   ;;  %3103 = vset.pattern.permute.xlu1 %v3520_v16 }
  0x6e   :  { %2849 = vmatpush3.bf16.msra.mxu0 %v3114_v0  ;;  %2864 = vmatprep.mubr.bf16.mxu0 %v3122_v4  ;;  %v3118_v5 = vld [vmem:[#allocation7 + $0x20] sm:$0xff]   ;;  %v3119_v6 = vld [vmem:[#allocation7 + $0x28] sm:$0xff]   ;;  %v3120_v7 = vld [vmem:[#allocation7 + $0x30] sm:$0xff]  }
  0x6f   :  { %2850 = vmatprep.subr.bf16.mxu0 %v3115_v1  ;;  %v3121_v8 = vld [vmem:[#allocation7 + $0x38] sm:$0xff]   ;;  %v3123_v9 = vld [vmem:[#allocation2 + $0x8] sm:$0xff]   ;;  %v3124_v10 = vld [vmem:[#allocation2 + $0x10] sm:$0xff]   ;;  %3102 = vset.pattern.permute.xlu0 %v3520_v16 }
  0x70   :  { %v3125_v11 = vld [vmem:[#allocation2 + $0x18] sm:$0xff]   ;;  %v3126_v12 = vld [vmem:[#allocation2 + $0x20] sm:$0xff]   ;;  %v3127_v13 = vld [vmem:[#allocation2 + $0x28] sm:$0xff]  }
  0x71   :  { %v3128_v14 = vld [vmem:[#allocation2 + $0x30] sm:$0xff]   ;;  %v3129_v15 = vld [vmem:[#allocation2 + $0x38] sm:$0xff]   ;;  %v3702_v17 = vld [vmem:[%s4420_s2] ss:$0 sm:$0xff] }
  0x72   :  { %2851 = vmatpush3.bf16.msra.mxu0 %v3115_v1 }
  0x73   :  { %2852 = vmatprep.subr.bf16.mxu0 %v3116_v2 }
  0x76   :  { %2853 = vmatpush3.bf16.msra.mxu0 %v3116_v2 }
  0x77   :  { %2854 = vmatprep.subr.bf16.mxu0 %v3117_v3 }
  0x7a   :  { %2855 = vmatpush3.bf16.msra.mxu0 %v3117_v3 }
  0x7b   :  { %2856 = vmatprep.subr.bf16.mxu0 %v3118_v5 }
  0x7e   :  { %2857 = vmatpush3.bf16.msra.mxu0 %v3118_v5 }
  0x7f   :  { %2858 = vmatprep.subr.bf16.mxu0 %v3119_v6 }
  0x82   :  { %2859 = vmatpush3.bf16.msra.mxu0 %v3119_v6 }
  0x83   :  { %2860 = vmatprep.subr.bf16.mxu0 %v3120_v7 }
  0x86   :  { %2861 = vmatpush3.bf16.msra.mxu0 %v3120_v7 }
  0x87   :  { %2862 = vmatprep.subr.bf16.mxu0 %v3121_v8 }
  0x8a   :  { %2863 = vmatpush3.bf16.msra.mxu0 %v3121_v8 }
  0x8d   :  { %2865 = vmatmul.mubr.bf16.vlgmr.msra.gmra.mrb[0].mxu0 %v3123_v9 }
  0x8e   :  { %2868 = vmatprep.mubr.bf16.mxu0 %v3124_v10 }
  0x95   :  { %2869 = vmatmul.mubr.bf16.gmra.mrb[4].mxu0 %v3125_v11 }
  0x96   :  { %2872 = vmatprep.mubr.bf16.mxu0 %v3126_v12 }
  0x9d   :  { %2873 = vmatmul.mubr.bf16.gmra.mrb[8].mxu0 %v3127_v13 }
  0x9e   :  { %2876 = vmatprep.mubr.bf16.mxu0 %v3128_v14 }
  0xa5   :  { %2877 = vmatmul.mubr.bf16.gmra.mrb[12].mxu0 %v3129_v15 }
 0x160   :  { %v3704_v18 = vpop.f32.mrb[0].mxu0 }
 0x161   :  { %399 = vrot.lane.b32.xlu1 %v3704_v18, %s3521_s30  ;;  %v3708_v19 = vpop.f32.mrb[1].mxu0  ;;  %v357_v21 = vadd.f32 %v3704_v18, %v3702_v17 }
 0x162   :  { %395 = vrot.lane.b32.xlu0 %v3708_v19, %s3521_s30  ;;  %v3712_v20 = vpop.f32.mrb[2].mxu0  ;;  %v355_v24 = vadd.f32 %v3702_v17, %v3708_v19 }
 0x163   :  { %v358_v22 = vadd.f32 %v3712_v20, %v3702_v17  ;;  %v289_v23 = vpop.f32.mrb[3].mxu0 }
 0x164   :  { %v356_v25 = vadd.f32 %v3702_v17, %v289_v23 }
 0x165   :  { %401 = vrot.lane.b32.xlu1 %v3712_v20, %s3521_s30  ;;  %v372_v26 = vpack.c.bf16 %v358_v22, %v357_v21 }
 0x166   :  { %397 = vrot.lane.b32.xlu0 %v289_v23, %s3521_s30  ;;  %v371_v27 = vpack.c.bf16 %v356_v25, %v355_v24 }
 0x168   :  { %v2870_v28 = vpop.f32.mrb[4].mxu0  ;;  %2880 = vmatprep.subr.bf16.mxu1 %v371_v27 }
 0x169   :  { %v302_v29 = vpop.f32.mrb[5].mxu0  ;;  %2881 = vmatpush3.bf16.msra.mxu1 %v371_v27  ;;  %v361_v31 = vadd.f32 %v2870_v28, %v3702_v17 }
 0x16a   :  { %407 = vrot.lane.b32.xlu0 %v2870_v28, %s3521_s30  ;;  %v2871_v30 = vpop.f32.mrb[6].mxu0  ;;  %2882 = vmatprep.subr.bf16.mxu1 %v372_v26  ;;  %v359_v34 = vadd.f32 %v3702_v17, %v302_v29 }
 0x16b   :  { %v362_v32 = vadd.f32 %v2871_v30, %v3702_v17  ;;  %409 = vrot.lane.b32.xlu1 %v2871_v30, %s3521_s30  ;;  %v305_v33 = vpop.f32.mrb[7].mxu0 }
 0x16c   :  { %v360_v35 = vadd.f32 %v3702_v17, %v305_v33 }
 0x16d   :  { %2883 = vmatpush3.bf16.msra.mxu1 %v372_v26  ;;  %v374_v36 = vpack.c.bf16 %v362_v32, %v361_v31  ;;  %v2698_v26 = vld [vmem:[#allocation5] sm:$0xff]  }
 0x16e   :  { %403 = vrot.lane.b32.xlu0 %v302_v29, %s3521_s30  ;;  %v373_v37 = vpack.c.bf16 %v360_v35, %v359_v34  ;;  %v3769_v35 = vunpack.c.h.bf16 %v2698_v26 }
 0x16f   :  { %405 = vrot.lane.b32.xlu1 %v305_v33, %s3521_s30 }
 0x170   :  { %v2874_v38 = vpop.f32.mrb[8].mxu0  ;;  %2884 = vmatprep.subr.bf16.mxu1 %v373_v37 }
 0x171   :  { %v318_v39 = vpop.f32.mrb[9].mxu0  ;;  %2885 = vmatpush3.bf16.msra.mxu1 %v373_v37  ;;  %v365_v41 = vadd.f32 %v2874_v38, %v3702_v17 }
 0x172   :  { %415 = vrot.lane.b32.xlu0 %v2874_v38, %s3521_s30  ;;  %v2875_v40 = vpop.f32.mrb[10].mxu0  ;;  %2886 = vmatprep.subr.bf16.mxu1 %v374_v36  ;;  %v363_v44 = vadd.f32 %v3702_v17, %v318_v39 }
 0x173   :  { %v366_v42 = vadd.f32 %v2875_v40, %v3702_v17  ;;  %417 = vrot.lane.b32.xlu1 %v2875_v40, %s3521_s30  ;;  %v321_v43 = vpop.f32.mrb[11].mxu0 }
 0x174   :  { %v364_v45 = vadd.f32 %v3702_v17, %v321_v43 }
 0x175   :  { %2887 = vmatpush3.bf16.msra.mxu1 %v374_v36  ;;  %v376_v46 = vpack.c.bf16 %v366_v42, %v365_v41 }
 0x176   :  { %411 = vrot.lane.b32.xlu0 %v318_v39, %s3521_s30  ;;  %v375_v47 = vpack.c.bf16 %v364_v45, %v363_v44 }
 0x177   :  { %413 = vrot.lane.b32.xlu1 %v321_v43, %s3521_s30 }
 0x178   :  { %2888 = vmatprep.subr.bf16.mxu1 %v375_v47  ;;  %v2878_v48 = vpop.f32.mrb[12].mxu0 }
 0x179   :  { %v369_v49 = vadd.f32 %v2878_v48, %v3702_v17  ;;  %2889 = vmatpush3.bf16.msra.mxu1 %v375_v47  ;;  %v334_v50 = vpop.f32.mrb[13].mxu0 }
 0x17a   :  { %423 = vrot.lane.b32.xlu0 %v2878_v48, %s3521_s30  ;;  %2890 = vmatprep.subr.bf16.mxu1 %v376_v46  ;;  %v367_v51 = vadd.f32 %v3702_v17, %v334_v50  ;;  %v2879_v52 = vpop.f32.mrb[14].mxu0 }
 0x17b   :  { %480 = vperm.xlu1 %3103, %v289_v23   ;;  %v370_v53 = vadd.f32 %v2879_v52, %v3702_v17  ;;  %v337_v54 = vpop.f32.mrb[15].mxu0 }
 0x17c   :  { %v368_v55 = vadd.f32 %v3702_v17, %v337_v54 }
 0x17d   :  { %2891 = vmatpush3.bf16.msra.mxu1 %v376_v46  ;;  %v378_v56 = vpack.c.bf16 %v370_v53, %v369_v49 }
 0x17e   :  { %419 = vrot.lane.b32.xlu0 %v334_v50, %s3521_s30  ;;  %v377_v57 = vpack.c.bf16 %v368_v55, %v367_v51  ;;  %v2730_v51 = vld [vmem:[#allocation5 + $0x10] sm:$0xff]  }
 0x17f   :  { %484 = vperm.xlu1 %3103, %v3704_v18   ;;  %v3790_v53 = vunpack.c.l.bf16 %v2730_v51 }
 0x180   :  { %2892 = vmatprep.subr.bf16.mxu1 %v377_v57 }
 0x181   :  { %2893 = vmatpush3.bf16.msra.mxu1 %v377_v57 }
 0x182   :  { %476 = vperm.xlu0 %3102, %v3708_v19   ;;  %2894 = vmatprep.subr.bf16.mxu1 %v378_v56 }
 0x183   :  { %492 = vperm.xlu1 %3103, %v302_v29  }
 0x185   :  { %2895 = vmatpush3.bf16.msra.mxu1 %v378_v56 }
 0x186   :  { %488 = vperm.xlu0 %3102, %v3712_v20   ;;  %v539_v20 = vlaneseq }
 0x187   :  { %500 = vperm.xlu1 %3103, %v2870_v28  }
 0x188   :  { %v540_v21 = vshrl.u32 %v539_v20, 7 }
 0x18a   :  { %496 = vperm.xlu0 %3102, %v305_v33   ;;  %v3759_v22 = vsub.s32 0, %v540_v21 }
 0x18b   :  { %508 = vperm.xlu1 %3103, %v318_v39   ;;  %v2729_v39 = vld [vmem:[#allocation5 + $0x8] sm:$0xff]  }
 0x18c   :  { %v3776_v41 = vunpack.c.l.bf16 %v2729_v39  ;;  %v3783_v47 = vunpack.c.h.bf16 %v2729_v39 }
 0x18e   :  { %504 = vperm.xlu0 %3102, %v2871_v30   ;;  %v3766_v30 = vunpack.c.l.bf16 %v2698_v26 }
 0x18f   :  { %516 = vperm.xlu1 %3103, %v2874_v38  }
 0x192   :  { %512 = vperm.xlu0 %3102, %v321_v43  }
 0x193   :  { %532 = vperm.xlu1 %3103, %v2878_v48  }
 0x196   :  { %520 = vperm.xlu0 %3102, %v2875_v40  }
 0x197   :  { %524 = vperm.xlu1 %3103, %v334_v50  }
 0x19a   :  { %536 = vperm.xlu0 %3102, %v2879_v52  }
 0x19b   :  { %425 = vrot.lane.b32.xlu1 %v2879_v52, %s3521_s30 }
 0x19e   :  { %528 = vperm.xlu0 %3102, %v337_v54  }
 0x19f   :  { %421 = vrot.lane.b32.xlu1 %v337_v54, %s3521_s30 }
 0x1d3   :  { %v400_v59 = vpop.permute.xlu1 %399 }
 0x1d4   :  { %v396_v58 = vpop.permute.xlu0 %395 }
 0x1d5   :  { %443 = vxpose.xlu1.b32.start [1/16] (narrow) %v396_v58, 8 }
 0x1d7   :  { %v402_v61 = vpop.permute.xlu1 %401 }
 0x1d8   :  { %v398_v60 = vpop.permute.xlu0 %397 }
 0x1d9   :  { %444 = vxpose.xlu1.b32.cont [2/16] (narrow) %v398_v60, 8 }
 0x1dc   :  { %v408_v62 = vpop.permute.xlu0 %407 }
 0x1dd   :  { %445 = vxpose.xlu1.b32.cont [3/16] (narrow) %v400_v59, 8  ;;  %v410_v63 = vpop.permute.xlu1 %409  ;;  %v3797_v59 = vunpack.c.h.bf16 %v2730_v51 }
 0x1e0   :  { %v404_v0 = vpop.permute.xlu0 %403 }
 0x1e1   :  { %446 = vxpose.xlu1.b32.cont [4/16] (narrow) %v402_v61, 8  ;;  %v406_v1 = vpop.permute.xlu1 %405 }
 0x1e4   :  { %v416_v2 = vpop.permute.xlu0 %415 }
 0x1e5   :  { %447 = vxpose.xlu1.b32.cont [5/16] (narrow) %v404_v0, 8  ;;  %v418_v3 = vpop.permute.xlu1 %417 }
 0x1e8   :  { %v412_v4 = vpop.permute.xlu0 %411 }
 0x1e9   :  { %448 = vxpose.xlu1.b32.cont [6/16] (narrow) %v406_v1, 8  ;;  %v414_v5 = vpop.permute.xlu1 %413 }
 0x1ec   :  { %v424_v7 = vpop.permute.xlu0 %423 }
 0x1ed   :  { %449 = vxpose.xlu1.b32.cont [7/16] (narrow) %v408_v62, 8 }
 0x1f0   :  { %v420_v10 = vpop.permute.xlu0 %419 }
 0x1f1   :  { %450 = vxpose.xlu1.b32.cont [8/16] (narrow) %v410_v63, 8  ;;  %v2731_v63 = vld [vmem:[#allocation5 + $0x18] sm:$0xff]  }
 0x1f2   :  { %v3804_v1 = vunpack.c.l.bf16 %v2731_v63 }
 0x1f5   :  { %451 = vxpose.xlu1.b32.cont [9/16] (narrow) %v412_v4, 8 }
 0x1f9   :  { %452 = vxpose.xlu1.b32.cont [10/16] (narrow) %v414_v5, 8 }
 0x1fa   :  { %v481_v6 = vpop.permute.xlu1 %480 }
 0x1fd   :  { %453 = vxpose.xlu1.b32.cont [11/16] (narrow) %v416_v2, 8 }
 0x1fe   :  { %v485_v8 = vpop.permute.xlu1 %484 }
 0x201   :  { %454 = vxpose.xlu1.b32.cont [12/16] (narrow) %v418_v3, 8  ;;  %v477_v25 = vpop.permute.xlu0 %476 }
 0x202   :  { %v493_v9 = vpop.permute.xlu1 %492 }
 0x205   :  { %455 = vxpose.xlu1.b32.cont [13/16] (narrow) %v420_v10, 8  ;;  %v489_v34 = vpop.permute.xlu0 %488 }
 0x206   :  { %v501_v11 = vpop.permute.xlu1 %500 }
 0x209   :  { %v497_v46 = vpop.permute.xlu0 %496 }
 0x20a   :  { %v3751_v12 = vpop.permute.xlu1 %508 }
 0x20d   :  { %v505_v58 = vpop.permute.xlu0 %504 }
 0x20e   :  { %v3753_v13 = vpop.permute.xlu1 %516 }
 0x212   :  { %v3755_v14 = vpop.permute.xlu1 %532 }
 0x216   :  { %v3757_v15 = vpop.permute.xlu1 %524 }
 0x21a   :  { %v426_v18 = vpop.permute.xlu1 %425 }
 0x21e   :  { %v422_v19 = vpop.permute.xlu1 %421 }
 0x21f   :  { %456 = vxpose.xlu1.b32.cont [14/16] (narrow) %v422_v19, 8 }
 0x223   :  { %457 = vxpose.xlu1.b32.cont [15/16] (narrow) %v424_v7, 8  ;;  %v3812_v7 = vunpack.c.h.bf16 %v2731_v63 }
 0x227   :  { %458 = vxpose.xlu1.b32.end [16/16] (narrow) %v426_v18, 8 }
 0x26b   :  { %v459_v23 = vpop.trf.xlu1 }
 0x26c   :  { %v3762_v24 = vrot.slane %v459_v23, %v3759_v22 }
 0x26e   :  { %v543_v27 = vadd.f32 %v3762_v24, %v477_v25  ;;  %v544_v28 = vadd.f32 %v3762_v24, %v481_v6  ;;  %v545_v32 = vadd.f32 %v3762_v24, %v485_v8  ;;  %v546_v40 = vadd.f32 %v3762_v24, %v489_v34  ;;  %v513_v6 = vpop.permute.xlu0 %512 }
 0x26f   :  { %v547_v45 = vadd.f32 %v3762_v24, %v493_v9  ;;  %v548_v52 = vadd.f32 %v3762_v24, %v497_v46  ;;  %v549_v57 = vadd.f32 %v3762_v24, %v501_v11  ;;  %v550_v0 = vadd.f32 %v3762_v24, %v505_v58  ;;  %v2732_v11 = vld [vmem:[#allocation5 + $0x20] sm:$0xff]  }
 0x270   :  { %v559_v29 = vmul.f32 0.2, %v543_v27  ;;  %v560_v31 = vmul.f32 0.2, %v544_v28  ;;  %v561_v38 = vmul.f32 0.2, %v545_v32  ;;  %v551_v5 = vadd.f32 %v3762_v24, %v3751_v12 }
 0x271   :  { %v562_v44 = vmul.f32 0.2, %v546_v40  ;;  %v563_v50 = vmul.f32 0.2, %v547_v45  ;;  %v564_v56 = vmul.f32 0.2, %v548_v52  ;;  %v552_v18 = vadd.f32 %v3762_v24, %v513_v6 }
 0x272   :  { %v575_v33 = vmax.f32 %v543_v27, %v559_v29  ;;  %v576_v37 = vmax.f32 %v544_v28, %v560_v31  ;;  %v577_v43 = vmax.f32 %v545_v32, %v561_v38  ;;  %v565_v62 = vmul.f32 0.2, %v549_v57  ;;  %v521_v19 = vpop.permute.xlu0 %520  ;;  %v2733_v31 = vld [vmem:[#allocation5 + $0x28] sm:$0xff]  }
 0x273   :  { %v578_v49 = vmax.f32 %v546_v40, %v562_v44  ;;  %v579_v55 = vmax.f32 %v547_v45, %v563_v50  ;;  %v580_v61 = vmax.f32 %v548_v52, %v564_v56  ;;  %v566_v4 = vmul.f32 0.2, %v550_v0 }
 0x274   :  { %v3772_v36 = vadd.f32 %v3766_v30, %v575_v33  ;;  %v3779_v42 = vadd.f32 %v3769_v35, %v576_v37  ;;  %v3786_v48 = vadd.f32 %v3776_v41, %v577_v43  ;;  %v581_v3 = vmax.f32 %v549_v57, %v565_v62 }
 0x275   :  { %v3793_v54 = vadd.f32 %v3783_v47, %v578_v49  ;;  %v3800_v60 = vadd.f32 %v3790_v53, %v579_v55  ;;  %v3807_v2 = vadd.f32 %v3797_v59, %v580_v61  ;;  %v582_v9 = vmax.f32 %v550_v0, %v566_v4  ;;  %v2734_v49 = vld [vmem:[#allocation5 + $0x30] sm:$0xff]   ;;  %v2735_v0 = vld [vmem:[#allocation5 + $0x38] sm:$0xff]  }
 0x276   :  { %639 = vmax.xlane.f32.xlu0 %v3772_v36  ;;  %v3815_v8 = vadd.f32 %v3804_v1, %v581_v3  ;;  %v567_v10 = vmul.f32 0.2, %v551_v5  ;;  %v3819_v20 = vunpack.c.l.bf16 %v2732_v11  ;;  %v568_v23 = vmul.f32 0.2, %v552_v18  ;;  %v537_v33 = vpop.permute.xlu0 %536 }
 0x277   :  { %v3822_v12 = vadd.f32 %v3812_v7, %v582_v9  ;;  %v553_v25 = vadd.f32 %v3762_v24, %v3753_v13  ;;  %v3827_v26 = vunpack.c.h.bf16 %v2732_v11  ;;  %v554_v32 = vadd.f32 %v3762_v24, %v521_v19 }
 0x278   :  { %v583_v21 = vmax.f32 %v551_v5, %v567_v10  ;;  %v584_v28 = vmax.f32 %v552_v18, %v568_v23  ;;  %v3834_v34 = vunpack.c.l.bf16 %v2733_v31  ;;  %v555_v39 = vadd.f32 %v3762_v24, %v3757_v15 }
 0x279   :  { %v569_v29 = vmul.f32 0.2, %v553_v25  ;;  %v570_v38 = vmul.f32 0.2, %v554_v32  ;;  %v3842_v43 = vunpack.c.h.bf16 %v2733_v31  ;;  %v3849_v51 = vunpack.c.l.bf16 %v2734_v49 }
 0x27a   :  { %641 = vmax.xlane.f32.xlu0 %v3779_v42  ;;  %v3830_v27 = vadd.f32 %v3819_v20, %v583_v21  ;;  %v3837_v37 = vadd.f32 %v3827_v26, %v584_v28  ;;  %v529_v40 = vpop.permute.xlu0 %528  ;;  %v571_v46 = vmul.f32 0.2, %v555_v39  ;;  %v557_v56 = vadd.f32 %v3762_v24, %v3755_v14 }
 0x27b   :  { %v585_v13 = vmax.f32 %v553_v25, %v569_v29  ;;  %v586_v45 = vmax.f32 %v554_v32, %v570_v38  ;;  %v556_v50 = vadd.f32 %v3762_v24, %v529_v40  ;;  %v3857_v57 = vunpack.c.h.bf16 %v2734_v49 }
 0x27c   :  { %v587_v15 = vmax.f32 %v555_v39, %v571_v46  ;;  %v573_v62 = vmul.f32 0.2, %v557_v56  ;;  %v558_v63 = vadd.f32 %v3762_v24, %v537_v33  ;;  %v3867_v5 = vunpack.c.l.bf16 %v2735_v0 }
 0x27d   :  { %v3845_v44 = vadd.f32 %v3834_v34, %v585_v13  ;;  %v3852_v52 = vadd.f32 %v3842_v43, %v586_v45  ;;  %v572_v55 = vmul.f32 0.2, %v556_v50  ;;  %v3873_v10 = vunpack.c.h.bf16 %v2735_v0 }
 0x27e   :  { %643 = vmax.xlane.f32.xlu0 %v3786_v48  ;;  %v3860_v58 = vadd.f32 %v3849_v51, %v587_v15  ;;  %v589_v4 = vmax.f32 %v557_v56, %v573_v62  ;;  %v574_v14 = vmul.f32 0.2, %v558_v63 }
 0x27f   :  { %v588_v61 = vmax.f32 %v556_v50, %v572_v55 }
 0x280   :  { %v3871_v6 = vadd.f32 %v3867_v5, %v589_v4  ;;  %v590_v9 = vmax.f32 %v558_v63, %v574_v14 }
 0x281   :  { %v3865_v3 = vadd.f32 %v3857_v57, %v588_v61 }
 0x282   :  { %645 = vmax.xlane.f32.xlu0 %v3793_v54  ;;  %v3877_v24 = vadd.f32 %v3873_v10, %v590_v9 }
 0x286   :  { %647 = vmax.xlane.f32.xlu0 %v3800_v60 }
 0x28a   :  { %649 = vmax.xlane.f32.xlu0 %v3807_v2 }
 0x28e   :  { %651 = vmax.xlane.f32.xlu0 %v3815_v8 }
 0x292   :  { %653 = vmax.xlane.f32.xlu0 %v3822_v12 }
 0x296   :  { %655 = vmax.xlane.f32.xlu0 %v3830_v27 }
 0x29a   :  { %657 = vmax.xlane.f32.xlu0 %v3837_v37 }
 0x29e   :  { %659 = vmax.xlane.f32.xlu0 %v3845_v44 }
 0x2a2   :  { %661 = vmax.xlane.f32.xlu0 %v3852_v52 }
 0x2a6   :  { %663 = vmax.xlane.f32.xlu0 %v3860_v58 }
 0x2aa   :  { %665 = vmax.xlane.f32.xlu0 %v3865_v3 }
 0x2ae   :  { %667 = vmax.xlane.f32.xlu0 %v3871_v6 }
 0x2b2   :  { %669 = vmax.xlane.f32.xlu0 %v3877_v24 }
 0x303   :  { %v640_v11 = vpop.xlane.xlu0 %639 }
 0x304   :  { %v671_v18 = vsub.f32 %v3772_v36, %v640_v11 }
 0x306   :  { %v687_v19 = vmul.f32 1.442695, %v671_v18 }
 0x307   :  { %v642_v21 = vpop.xlane.xlu0 %641 }
 0x308   :  { %v672_v23 = vsub.f32 %v3779_v42, %v642_v21  ;;  %3154 = vpow2.f32 %v687_v19 }
 0x30a   :  { %v689_v25 = vmul.f32 1.442695, %v672_v23 }
 0x30b   :  { %v644_v28 = vpop.xlane.xlu0 %643 }
 0x30c   :  { %3156 = vpow2.f32 %v689_v25  ;;  %v673_v29 = vsub.f32 %v3786_v48, %v644_v28 }
 0x30e   :  { %v691_v31 = vmul.f32 1.442695, %v673_v29 }
 0x30f   :  { %v646_v32 = vpop.xlane.xlu0 %645 }
 0x310   :  { %v674_v33 = vsub.f32 %v3793_v54, %v646_v32  ;;  %3158 = vpow2.f32 %v691_v31 }
 0x312   :  { %v693_v13 = vmul.f32 1.442695, %v674_v33  ;;  %v3155_v39 = vpop.eup %3154 }
 0x313   :  { %v648_v38 = vpop.xlane.xlu0 %647 }
 0x314   :  { %3160 = vpow2.f32 %v693_v13  ;;  %v675_v36 = vsub.f32 %v3800_v60, %v648_v38 }
 0x316   :  { %v3157_v40 = vpop.eup %3156  ;;  %v695_v45 = vmul.f32 1.442695, %v675_v36 }
 0x317   :  { %v650_v42 = vpop.xlane.xlu0 %649  ;;  %v719_v46 = vpack.c.bf16 %v3157_v40, %v3155_v39 }
 0x318   :  { %v676_v49 = vsub.f32 %v3807_v2, %v650_v42  ;;  %3162 = vpow2.f32 %v695_v45 }
 0x319   :  { %2896 = vmatprep.mubr.bf16.mxu1 %v719_v46 }
 0x31a   :  { %v697_v50 = vmul.f32 1.442695, %v676_v49  ;;  %v3159_v15 = vpop.eup %3158 }
 0x31b   :  { %v652_v48 = vpop.xlane.xlu0 %651 }
 0x31c   :  { %3164 = vpow2.f32 %v697_v50  ;;  %v677_v54 = vsub.f32 %v3815_v8, %v652_v48 }
 0x31e   :  { %v3161_v55 = vpop.eup %3160  ;;  %v699_v56 = vmul.f32 1.442695, %v677_v54 }
 0x31f   :  { %v654_v61 = vpop.xlane.xlu0 %653  ;;  %v720_v62 = vpack.c.bf16 %v3161_v55, %v3159_v15 }
 0x320   :  { %v678_v60 = vsub.f32 %v3822_v12, %v654_v61  ;;  %3166 = vpow2.f32 %v699_v56 }
 0x321   :  { %2897 = vmatmul.mubr.bf16.vlgmr.msra.gmra.mrb[0].mxu1 %v720_v62 }
 0x322   :  { %v701_v63 = vmul.f32 1.442695, %v678_v60  ;;  %v3163_v4 = vpop.eup %3162 }
 0x323   :  { %v656_v0 = vpop.xlane.xlu0 %655 }
 0x324   :  { %3168 = vpow2.f32 %v701_v63  ;;  %v679_v2 = vsub.f32 %v3830_v27, %v656_v0  ;;  %v3130_v63 = vld [vmem:[#allocation8] sm:$0xff]   ;;  %v3131_v0 = vld [vmem:[#allocation8 + $0x8] sm:$0xff]  }
 0x325   :  { %2912 = vmatprep.subr.bf16.mxu0 %v3130_v63 }
 0x326   :  { %v3165_v14 = vpop.eup %3164  ;;  %v703_v9 = vmul.f32 1.442695, %v679_v2  ;;  %2913 = vmatpush3.bf16.msra.mxu0 %v3130_v63  ;;  %v3133_v2 = vld [vmem:[#allocation8 + $0x18] sm:$0xff]  }
 0x327   :  { %v658_v11 = vpop.xlane.xlu0 %657  ;;  %v721_v18 = vpack.c.bf16 %v3165_v14, %v3163_v4  ;;  %2914 = vmatprep.subr.bf16.mxu0 %v3131_v0  ;;  %v3134_v4 = vld [vmem:[#allocation8 + $0x20] sm:$0xff]  }
 0x328   :  { %v680_v8 = vsub.f32 %v3837_v37, %v658_v11  ;;  %3170 = vpow2.f32 %v703_v9 }
 0x329   :  { %2900 = vmatprep.mubr.bf16.mxu1 %v721_v18 }
 0x32a   :  { %v705_v19 = vmul.f32 1.442695, %v680_v8  ;;  %v3167_v23 = vpop.eup %3166  ;;  %2915 = vmatpush3.bf16.msra.mxu0 %v3131_v0 }
 0x32b   :  { %v660_v21 = vpop.xlane.xlu0 %659 }
 0x32c   :  { %3172 = vpow2.f32 %v705_v19  ;;  %v681_v12 = vsub.f32 %v3845_v44, %v660_v21 }
 0x32e   :  { %v3169_v25 = vpop.eup %3168  ;;  %v707_v28 = vmul.f32 1.442695, %v681_v12  ;;  %v3135_v12 = vld [vmem:[#allocation8 + $0x28] sm:$0xff]  }
 0x32f   :  { %v662_v29 = vpop.xlane.xlu0 %661  ;;  %v722_v31 = vpack.c.bf16 %v3169_v25, %v3167_v23 }
 0x330   :  { %v682_v27 = vsub.f32 %v3852_v52, %v662_v29  ;;  %3174 = vpow2.f32 %v707_v28  ;;  %v3136_v29 = vld [vmem:[#allocation8 + $0x30] sm:$0xff]  }
 0x331   :  { %2901 = vmatmul.mubr.bf16.gmra.mrb[4].mxu1 %v722_v31 }
 0x332   :  { %v709_v32 = vmul.f32 1.442695, %v682_v27  ;;  %v3171_v13 = vpop.eup %3170 }
 0x333   :  { %v664_v33 = vpop.xlane.xlu0 %663 }
 0x334   :  { %3176 = vpow2.f32 %v709_v32  ;;  %v683_v37 = vsub.f32 %v3860_v58, %v664_v33  ;;  %v3137_v32 = vld [vmem:[#allocation8 + $0x38] sm:$0xff]  }
 0x336   :  { %v3173_v38 = vpop.eup %3172  ;;  %v711_v36 = vmul.f32 1.442695, %v683_v37 }
 0x337   :  { %v666_v39 = vpop.xlane.xlu0 %665  ;;  %v723_v40 = vpack.c.bf16 %v3173_v38, %v3171_v13 }
 0x338   :  { %v684_v44 = vsub.f32 %v3865_v3, %v666_v39  ;;  %3178 = vpow2.f32 %v711_v36 }
 0x339   :  { %2904 = vmatprep.mubr.bf16.mxu1 %v723_v40 }
 0x33a   :  { %v713_v45 = vmul.f32 1.442695, %v684_v44  ;;  %v3175_v46 = vpop.eup %3174 }
 0x33b   :  { %v668_v42 = vpop.xlane.xlu0 %667 }
 0x33c   :  { %3180 = vpow2.f32 %v713_v45  ;;  %v685_v52 = vsub.f32 %v3871_v6, %v668_v42  ;;  %v3522_v6 = vmov 34  }
 0x33d   :  { %3105 = vset.pattern.permute.xlu1 %v3522_v6  ;;  %3104 = vset.pattern.permute.xlu0 %v3522_v6 }
 0x33e   :  { %v3177_v49 = vpop.eup %3176  ;;  %v715_v50 = vmul.f32 1.442695, %v685_v52 }
 0x33f   :  { %v670_v48 = vpop.xlane.xlu0 %669  ;;  %v724_v54 = vpack.c.bf16 %v3177_v49, %v3175_v46 }
 0x340   :  { %v686_v58 = vsub.f32 %v3877_v24, %v670_v48  ;;  %3182 = vpow2.f32 %v715_v50  ;;  %v3132_v24 = vld [vmem:[#allocation8 + $0x10] sm:$0xff]  }
 0x341   :  { %2905 = vmatmul.mubr.bf16.gmra.mrb[8].mxu1 %v724_v54  ;;  %2916 = vmatprep.subr.bf16.mxu0 %v3132_v24 }
 0x342   :  { %v717_v15 = vmul.f32 1.442695, %v686_v58  ;;  %v3179_v55 = vpop.eup %3178  ;;  %2917 = vmatpush3.bf16.msra.mxu0 %v3132_v24 }
 0x343   :  { %2918 = vmatprep.subr.bf16.mxu0 %v3133_v2 }
 0x344   :  { %3184 = vpow2.f32 %v717_v15 }
 0x346   :  { %v3181_v3 = vpop.eup %3180  ;;  %2919 = vmatpush3.bf16.msra.mxu0 %v3133_v2 }
 0x347   :  { %v725_v56 = vpack.c.bf16 %v3181_v3, %v3179_v55  ;;  %2920 = vmatprep.subr.bf16.mxu0 %v3134_v4 }
 0x349   :  { %2908 = vmatprep.mubr.bf16.mxu1 %v725_v56 }
 0x34a   :  { %v3183_v61 = vpop.eup %3182  ;;  %2921 = vmatpush3.bf16.msra.mxu0 %v3134_v4 }
 0x34b   :  { %2922 = vmatprep.subr.bf16.mxu0 %v3135_v12 }
 0x34e   :  { %v3185_v62 = vpop.eup %3184  ;;  %2923 = vmatpush3.bf16.msra.mxu0 %v3135_v12 }
 0x34f   :  { %v726_v60 = vpack.c.bf16 %v3185_v62, %v3183_v61  ;;  %2924 = vmatprep.subr.bf16.mxu0 %v3136_v29 }
 0x351   :  { %2909 = vmatmul.mubr.bf16.gmra.mrb[12].mxu1 %v726_v60  ;;  %v2669_v60 = vld [vmem:[%s4422_s4] ss:$0 sm:$0xff] }
 0x352   :  { %2925 = vmatpush3.bf16.msra.mxu0 %v3136_v29 }
 0x353   :  { %2926 = vmatprep.subr.bf16.mxu0 %v3137_v32 }
 0x356   :  { %2927 = vmatpush3.bf16.msra.mxu0 %v3137_v32 }
 0x3f4   :  { %v3898_v14 = vpop.f32.mrb[0].mxu1 }
 0x3f5   :  { %3186 = vrcp.f32 %v3898_v14  ;;  %v3901_v9 = vpop.f32.mrb[1].mxu1 }
 0x3f6   :  { %3188 = vrcp.f32 %v3901_v9  ;;  %v3904_v11 = vpop.f32.mrb[2].mxu1 }
 0x3f7   :  { %v3906_v18 = vpop.f32.mrb[3].mxu1 }
 0x3f8   :  { %3190 = vrcp.f32 %v3906_v18 }
 0x3f9   :  { %3192 = vrcp.f32 %v3904_v11 }
 0x3ff   :  { %v3187_v8 = vpop.eup %3186 }
 0x400   :  { %v3189_v19 = vpop.eup %3188  ;;  %852 = vperm.xlu1 %3105, %v3187_v8  }
 0x401   :  { %842 = vperm.xlu0 %3104, %v3189_v19  }
 0x402   :  { %v3191_v21 = vpop.eup %3190 }
 0x403   :  { %v3193_v31 = vpop.eup %3192 }
 0x404   :  { %847 = vperm.xlu1 %3105, %v3191_v21   ;;  %v3910_v23 = vpop.f32.mrb[4].mxu1 }
 0x405   :  { %v3912_v25 = vpop.f32.mrb[5].mxu1 }
 0x406   :  { %3194 = vrcp.f32 %v3912_v25  ;;  %v3915_v28 = vpop.f32.mrb[6].mxu1 }
 0x407   :  { %v3917_v27 = vpop.f32.mrb[7].mxu1 }
 0x408   :  { %3196 = vrcp.f32 %v3917_v27  ;;  %857 = vperm.xlu1 %3105, %v3193_v31  }
 0x409   :  { %3198 = vrcp.f32 %v3910_v23 }
 0x40a   :  { %3200 = vrcp.f32 %v3915_v28 }
 0x410   :  { %v3195_v33 = vpop.eup %3194 }
 0x411   :  { %862 = vperm.xlu0 %3104, %v3195_v33  }
 0x412   :  { %v3197_v37 = vpop.eup %3196 }
 0x413   :  { %867 = vperm.xlu1 %3105, %v3197_v37   ;;  %v3199_v13 = vpop.eup %3198 }
 0x414   :  { %v3922_v38 = vpop.f32.mrb[8].mxu1  ;;  %v3201_v39 = vpop.eup %3200 }
 0x415   :  { %872 = vperm.xlu0 %3104, %v3199_v13   ;;  %v3924_v36 = vpop.f32.mrb[9].mxu1 }
 0x416   :  { %3202 = vrcp.f32 %v3924_v36  ;;  %v3927_v40 = vpop.f32.mrb[10].mxu1 }
 0x417   :  { %877 = vperm.xlu1 %3105, %v3201_v39   ;;  %v3929_v44 = vpop.f32.mrb[11].mxu1 }
 0x418   :  { %3204 = vrcp.f32 %v3929_v44 }
 0x419   :  { %3206 = vrcp.f32 %v3922_v38 }
 0x41a   :  { %3208 = vrcp.f32 %v3927_v40 }
 0x420   :  { %v3203_v45 = vpop.eup %3202 }
 0x421   :  { %882 = vperm.xlu0 %3104, %v3203_v45  }
 0x422   :  { %v3205_v42 = vpop.eup %3204 }
 0x423   :  { %887 = vperm.xlu1 %3105, %v3205_v42   ;;  %v3207_v52 = vpop.eup %3206 }
 0x424   :  { %v3934_v46 = vpop.f32.mrb[12].mxu1  ;;  %v3209_v50 = vpop.eup %3208 }
 0x425   :  { %892 = vperm.xlu0 %3104, %v3207_v52   ;;  %v3936_v49 = vpop.f32.mrb[13].mxu1 }
 0x426   :  { %3210 = vrcp.f32 %v3936_v49  ;;  %v3939_v48 = vpop.f32.mrb[14].mxu1 }
 0x427   :  { %897 = vperm.xlu1 %3105, %v3209_v50   ;;  %v3941_v54 = vpop.f32.mrb[15].mxu1 }
 0x428   :  { %3212 = vrcp.f32 %v3941_v54 }
 0x429   :  { %3214 = vrcp.f32 %v3934_v46 }
 0x42a   :  { %3216 = vrcp.f32 %v3939_v48 }
 0x430   :  { %v3211_v58 = vpop.eup %3210 }
 0x431   :  { %902 = vperm.xlu0 %3104, %v3211_v58  }
 0x432   :  { %v3213_v15 = vpop.eup %3212 }
 0x433   :  { %907 = vperm.xlu1 %3105, %v3213_v15   ;;  %v3215_v55 = vpop.eup %3214 }
 0x434   :  { %v3217_v3 = vpop.eup %3216 }
 0x435   :  { %912 = vperm.xlu0 %3104, %v3215_v55  }
 0x437   :  { %917 = vperm.xlu1 %3105, %v3217_v3  }
 0x439   :  { %3106 = vset.pattern.permute.xlu0 %v3520_v16 }
 0x43b   :  { %3107 = vset.pattern.permute.xlu1 %v3520_v16 }
 0x47f   :  { %v853_v56 = vpop.permute.xlu1 %852 }
 0x480   :  { %v843_v61 = vpop.permute.xlu0 %842  ;;  %v922_v24 = vmul.f32 %v3898_v14, %v853_v56 }
 0x481   :  { %v920_v62 = vmul.f32 %v843_v61, %v3901_v9 }
 0x482   :  { %v944_v12 = vadd.f32 %v2669_v60, %v922_v24 }
 0x483   :  { %v848_v63 = vpop.permute.xlu1 %847  ;;  %v942_v2 = vadd.f32 %v2669_v60, %v920_v62 }
 0x484   :  { %v921_v0 = vmul.f32 %v848_v63, %v3906_v18 }
 0x486   :  { %v943_v4 = vadd.f32 %v2669_v60, %v921_v0 }
 0x487   :  { %v858_v8 = vpop.permute.xlu1 %857 }
 0x488   :  { %v923_v19 = vmul.f32 %v3904_v11, %v858_v8  ;;  %v958_v21 = vpack.c.bf16 %v943_v4, %v942_v2 }
 0x48a   :  { %v945_v29 = vadd.f32 %v2669_v60, %v923_v19  ;;  %2928 = vmatprep.mubr.bf16.mxu0 %v958_v21 }
 0x48c   :  { %v959_v31 = vpack.c.bf16 %v945_v29, %v944_v12 }
 0x48e   :  { %2929 = vmatmul.mubr.bf16.vlgmr.msra.gmra.mrb[16].mxu0 %v959_v31 }
 0x490   :  { %v863_v9 = vpop.permute.xlu0 %862 }
 0x491   :  { %v924_v32 = vmul.f32 %v863_v9, %v3912_v25 }
 0x492   :  { %v868_v33 = vpop.permute.xlu1 %867 }
 0x493   :  { %v925_v37 = vmul.f32 %v868_v33, %v3917_v27  ;;  %v946_v13 = vadd.f32 %v2669_v60, %v924_v32 }
 0x494   :  { %v873_v18 = vpop.permute.xlu0 %872 }
 0x495   :  { %v947_v14 = vadd.f32 %v2669_v60, %v925_v37  ;;  %v926_v39 = vmul.f32 %v3910_v23, %v873_v18 }
 0x496   :  { %v878_v45 = vpop.permute.xlu1 %877 }
 0x497   :  { %v927_v11 = vmul.f32 %v3915_v28, %v878_v45  ;;  %v960_v42 = vpack.c.bf16 %v947_v14, %v946_v13  ;;  %v948_v52 = vadd.f32 %v2669_v60, %v926_v39 }
 0x499   :  { %v949_v50 = vadd.f32 %v2669_v60, %v927_v11  ;;  %2932 = vmatprep.mubr.bf16.mxu0 %v960_v42 }
 0x49b   :  { %v961_v58 = vpack.c.bf16 %v949_v50, %v948_v52 }
 0x49d   :  { %2933 = vmatmul.mubr.bf16.gmra.mrb[20].mxu0 %v961_v58 }
 0x4a0   :  { %v883_v15 = vpop.permute.xlu0 %882 }
 0x4a1   :  { %v928_v25 = vmul.f32 %v883_v15, %v3924_v36 }
 0x4a2   :  { %v888_v55 = vpop.permute.xlu1 %887 }
 0x4a3   :  { %v929_v27 = vmul.f32 %v888_v55, %v3929_v44  ;;  %v950_v56 = vadd.f32 %v2669_v60, %v928_v25 }
 0x4a4   :  { %v893_v3 = vpop.permute.xlu0 %892 }
 0x4a5   :  { %v951_v61 = vadd.f32 %v2669_v60, %v929_v27  ;;  %v930_v23 = vmul.f32 %v3922_v38, %v893_v3 }
 0x4a6   :  { %v898_v62 = vpop.permute.xlu1 %897 }
 0x4a7   :  { %v931_v28 = vmul.f32 %v3927_v40, %v898_v62  ;;  %v962_v63 = vpack.c.bf16 %v951_v61, %v950_v56  ;;  %v952_v0 = vadd.f32 %v2669_v60, %v930_v23 }
 0x4a9   :  { %v953_v24 = vadd.f32 %v2669_v60, %v931_v28  ;;  %2936 = vmatprep.mubr.bf16.mxu0 %v962_v63 }
 0x4ab   :  { %v963_v2 = vpack.c.bf16 %v953_v24, %v952_v0 }
 0x4ad   :  { %2937 = vmatmul.mubr.bf16.gmra.mrb[24].mxu0 %v963_v2 }
 0x4b0   :  { %v903_v4 = vpop.permute.xlu0 %902 }
 0x4b1   :  { %v932_v36 = vmul.f32 %v903_v4, %v3936_v49 }
 0x4b2   :  { %v908_v8 = vpop.permute.xlu1 %907 }
 0x4b3   :  { %v933_v44 = vmul.f32 %v908_v8, %v3941_v54  ;;  %v954_v21 = vadd.f32 %v2669_v60, %v932_v36 }
 0x4b4   :  { %v913_v19 = vpop.permute.xlu0 %912 }
 0x4b5   :  { %v955_v12 = vadd.f32 %v2669_v60, %v933_v44  ;;  %v934_v38 = vmul.f32 %v3934_v46, %v913_v19 }
 0x4b6   :  { %v918_v29 = vpop.permute.xlu1 %917 }
 0x4b7   :  { %v935_v40 = vmul.f32 %v3939_v48, %v918_v29  ;;  %v964_v31 = vpack.c.bf16 %v955_v12, %v954_v21  ;;  %v956_v9 = vadd.f32 %v2669_v60, %v934_v38 }
 0x4b9   :  { %v957_v32 = vadd.f32 %v2669_v60, %v935_v40  ;;  %2940 = vmatprep.mubr.bf16.mxu0 %v964_v31 }
 0x4bb   :  { %v965_v33 = vpack.c.bf16 %v957_v32, %v956_v9 }
 0x4bd   :  { %2941 = vmatmul.mubr.bf16.gmra.mrb[28].mxu0 %v965_v33 }
 0x561   :  { %v2930_v37 = vpop.f32.mrb[16].mxu0 }
 0x562   :  { %v3967_v18 = vpop.f32.mrb[17].mxu0  ;;  %1172 = vrot.lane.b32.xlu0 %v2930_v37, %s3521_s30  ;;  %v1130_v54 = vadd.f32 %v2930_v37, %v3702_v17 }
 0x563   :  { %v3970_v49 = vpop.f32.mrb[18].mxu0  ;;  %v1128_v48 = vadd.f32 %v3702_v17, %v3967_v18 }
 0x564   :  { %v1131_v46 = vadd.f32 %v3970_v49, %v3702_v17  ;;  %v1068_v13 = vpop.f32.mrb[19].mxu0  ;;  %1174 = vrot.lane.b32.xlu1 %v3970_v49, %s3521_s30 }
 0x565   :  { %v1129_v60 = vadd.f32 %v3702_v17, %v1068_v13  ;;  %v3987_v17 = vld [vmem:[%s4420_s2] ss:$0 sm:$0xff] }
 0x566   :  { %1168 = vrot.lane.b32.xlu0 %v3967_v18, %s3521_s30  ;;  %v1145_v14 = vpack.c.bf16 %v1131_v46, %v1130_v54 }
 0x567   :  { %v1144_v39 = vpack.c.bf16 %v1129_v60, %v1128_v48 }
 0x568   :  { %1170 = vrot.lane.b32.xlu1 %v1068_v13, %s3521_s30 }
 0x569   :  { %2944 = vmatprep.subr.bf16.mxu1 %v1144_v39 }
 0x56a   :  { %2945 = vmatpush3.bf16.msra.mxu1 %v1144_v39 }
 0x56b   :  { %2946 = vmatprep.subr.bf16.mxu1 %v1145_v14 }
 0x56e   :  { %2947 = vmatpush3.bf16.msra.mxu1 %v1145_v14 }
 0x570   :  { %v2934_v45 = vpop.f32.mrb[20].mxu0 }
 0x571   :  { %v1081_v11 = vpop.f32.mrb[21].mxu0  ;;  %1180 = vrot.lane.b32.xlu0 %v2934_v45, %s3521_s30  ;;  %v1134_v52 = vadd.f32 %v3987_v17, %v2934_v45 }
 0x572   :  { %v2935_v42 = vpop.f32.mrb[22].mxu0  ;;  %v1132_v15 = vadd.f32 %v3987_v17, %v1081_v11 }
 0x573   :  { %v1135_v50 = vadd.f32 %v3987_v17, %v2935_v42  ;;  %v1084_v58 = vpop.f32.mrb[23].mxu0  ;;  %1182 = vrot.lane.b32.xlu1 %v2935_v42, %s3521_s30 }
 0x574   :  { %v1133_v25 = vadd.f32 %v3987_v17, %v1084_v58 }
 0x575   :  { %1176 = vrot.lane.b32.xlu0 %v1081_v11, %s3521_s30  ;;  %v1147_v55 = vpack.c.bf16 %v1135_v50, %v1134_v52 }
 0x576   :  { %v1146_v27 = vpack.c.bf16 %v1133_v25, %v1132_v15 }
 0x577   :  { %1178 = vrot.lane.b32.xlu1 %v1084_v58, %s3521_s30 }
 0x578   :  { %2948 = vmatprep.subr.bf16.mxu1 %v1146_v27 }
 0x579   :  { %2949 = vmatpush3.bf16.msra.mxu1 %v1146_v27 }
 0x57a   :  { %2950 = vmatprep.subr.bf16.mxu1 %v1147_v55 }
 0x57d   :  { %2951 = vmatpush3.bf16.msra.mxu1 %v1147_v55 }
 0x580   :  { %v2938_v3 = vpop.f32.mrb[24].mxu0 }
 0x581   :  { %v1097_v56 = vpop.f32.mrb[25].mxu0  ;;  %1188 = vrot.lane.b32.xlu0 %v2938_v3, %s3521_s30  ;;  %v1138_v23 = vadd.f32 %v3987_v17, %v2938_v3 }
 0x582   :  { %v2939_v61 = vpop.f32.mrb[26].mxu0  ;;  %v1136_v63 = vadd.f32 %v3987_v17, %v1097_v56 }
 0x583   :  { %v1139_v62 = vadd.f32 %v3987_v17, %v2939_v61  ;;  %v1100_v28 = vpop.f32.mrb[27].mxu0  ;;  %1190 = vrot.lane.b32.xlu1 %v2939_v61, %s3521_s30 }
 0x584   :  { %v1137_v0 = vadd.f32 %v3987_v17, %v1100_v28 }
 0x585   :  { %1184 = vrot.lane.b32.xlu0 %v1097_v56, %s3521_s30  ;;  %v1149_v24 = vpack.c.bf16 %v1139_v62, %v1138_v23 }
 0x586   :  { %v1148_v2 = vpack.c.bf16 %v1137_v0, %v1136_v63 }
 0x587   :  { %1186 = vrot.lane.b32.xlu1 %v1100_v28, %s3521_s30 }
 0x588   :  { %2952 = vmatprep.subr.bf16.mxu1 %v1148_v2 }
 0x589   :  { %2953 = vmatpush3.bf16.msra.mxu1 %v1148_v2 }
 0x58a   :  { %2954 = vmatprep.subr.bf16.mxu1 %v1149_v24 }
 0x58b   :  { %1253 = vperm.xlu1 %3107, %v1068_v13  }
 0x58d   :  { %2955 = vmatpush3.bf16.msra.mxu1 %v1149_v24 }
 0x58f   :  { %1257 = vperm.xlu1 %3107, %v2930_v37  }
 0x590   :  { %v2942_v4 = vpop.f32.mrb[28].mxu0 }
 0x591   :  { %1196 = vrot.lane.b32.xlu0 %v2942_v4, %s3521_s30  ;;  %v1113_v36 = vpop.f32.mrb[29].mxu0  ;;  %v1142_v44 = vadd.f32 %v3987_v17, %v2942_v4 }
 0x592   :  { %v2943_v8 = vpop.f32.mrb[30].mxu0  ;;  %v1140_v12 = vadd.f32 %v3987_v17, %v1113_v36 }
 0x593   :  { %v1143_v19 = vadd.f32 %v3987_v17, %v2943_v8  ;;  %1265 = vperm.xlu1 %3107, %v1081_v11   ;;  %v1116_v21 = vpop.f32.mrb[31].mxu0 }
 0x594   :  { %v1141_v38 = vadd.f32 %v3987_v17, %v1116_v21 }
 0x595   :  { %1192 = vrot.lane.b32.xlu0 %v1113_v36, %s3521_s30  ;;  %v1151_v29 = vpack.c.bf16 %v1143_v19, %v1142_v44 }
 0x596   :  { %v1150_v40 = vpack.c.bf16 %v1141_v38, %v1140_v12 }
 0x597   :  { %1273 = vperm.xlu1 %3107, %v2934_v45  }
 0x598   :  { %2956 = vmatprep.subr.bf16.mxu1 %v1150_v40 }
 0x599   :  { %1249 = vperm.xlu0 %3106, %v3967_v18   ;;  %2957 = vmatpush3.bf16.msra.mxu1 %v1150_v40 }
 0x59a   :  { %2958 = vmatprep.subr.bf16.mxu1 %v1151_v29 }
 0x59b   :  { %1281 = vperm.xlu1 %3107, %v1097_v56  }
 0x59d   :  { %1261 = vperm.xlu0 %3106, %v3970_v49   ;;  %2959 = vmatpush3.bf16.msra.mxu1 %v1151_v29 }
 0x59f   :  { %1289 = vperm.xlu1 %3107, %v2938_v3  }
 0x5a1   :  { %1269 = vperm.xlu0 %3106, %v1084_v58  }
 0x5a3   :  { %1305 = vperm.xlu1 %3107, %v2942_v4  }
 0x5a5   :  { %1277 = vperm.xlu0 %3106, %v2935_v42  }
 0x5a7   :  { %1297 = vperm.xlu1 %3107, %v1113_v36  }
 0x5a9   :  { %1285 = vperm.xlu0 %3106, %v1100_v28  }
 0x5ab   :  { %1198 = vrot.lane.b32.xlu1 %v2943_v8, %s3521_s30 }
 0x5ad   :  { %1293 = vperm.xlu0 %3106, %v2939_v61  }
 0x5af   :  { %1194 = vrot.lane.b32.xlu1 %v1116_v21, %s3521_s30 }
 0x5b1   :  { %1309 = vperm.xlu0 %3106, %v2943_v8  }
 0x5b5   :  { %1301 = vperm.xlu0 %3106, %v1116_v21  }
 0x5b9   :  { %3108 = vset.pattern.permute.xlu0 %v3522_v6 }
 0x5d4   :  { %v1173_v31 = vpop.permute.xlu0 %1172 }
 0x5d6   :  { %v1175_v9 = vpop.permute.xlu1 %1174 }
 0x5d8   :  { %v1169_v32 = vpop.permute.xlu0 %1168 }
 0x5d9   :  { %1216 = vxpose.xlu1.b32.start [1/16] (narrow) %v1169_v32, 8 }
 0x5da   :  { %v1171_v33 = vpop.permute.xlu1 %1170 }
 0x5dd   :  { %1217 = vxpose.xlu1.b32.cont [2/16] (narrow) %v1171_v33, 8 }
 0x5e1   :  { %1218 = vxpose.xlu1.b32.cont [3/16] (narrow) %v1173_v31, 8 }
 0x5e3   :  { %v1181_v37 = vpop.permute.xlu0 %1180 }
 0x5e5   :  { %1219 = vxpose.xlu1.b32.cont [4/16] (narrow) %v1175_v9, 8  ;;  %v1183_v18 = vpop.permute.xlu1 %1182 }
 0x5e7   :  { %v1177_v49 = vpop.permute.xlu0 %1176 }
 0x5e9   :  { %1220 = vxpose.xlu1.b32.cont [5/16] (narrow) %v1177_v49, 8  ;;  %v1179_v54 = vpop.permute.xlu1 %1178 }
 0x5ed   :  { %1221 = vxpose.xlu1.b32.cont [6/16] (narrow) %v1179_v54, 8 }
 0x5f1   :  { %1222 = vxpose.xlu1.b32.cont [7/16] (narrow) %v1181_v37, 8 }
 0x5f3   :  { %v1189_v46 = vpop.permute.xlu0 %1188 }
 0x5f5   :  { %1223 = vxpose.xlu1.b32.cont [8/16] (narrow) %v1183_v18, 8  ;;  %v1191_v13 = vpop.permute.xlu1 %1190 }
 0x5f7   :  { %v1185_v48 = vpop.permute.xlu0 %1184 }
 0x5f9   :  { %1224 = vxpose.xlu1.b32.cont [9/16] (narrow) %v1185_v48, 8  ;;  %v1187_v60 = vpop.permute.xlu1 %1186 }
 0x5fd   :  { %1225 = vxpose.xlu1.b32.cont [10/16] (narrow) %v1187_v60, 8 }
 0x601   :  { %1226 = vxpose.xlu1.b32.cont [11/16] (narrow) %v1189_v46, 8 }
 0x603   :  { %v1197_v14 = vpop.permute.xlu0 %1196 }
 0x605   :  { %1227 = vxpose.xlu1.b32.cont [12/16] (narrow) %v1191_v13, 8 }
 0x607   :  { %v1193_v39 = vpop.permute.xlu0 %1192 }
 0x609   :  { %1228 = vxpose.xlu1.b32.cont [13/16] (narrow) %v1193_v39, 8 }
 0x60a   :  { %v1254_v45 = vpop.permute.xlu1 %1253 }
 0x60e   :  { %v1258_v11 = vpop.permute.xlu1 %1257 }
 0x612   :  { %v1266_v42 = vpop.permute.xlu1 %1265 }
 0x616   :  { %v1274_v52 = vpop.permute.xlu1 %1273 }
 0x618   :  { %v1250_v61 = vpop.permute.xlu0 %1249 }
 0x61a   :  { %v1282_v50 = vpop.permute.xlu1 %1281 }
 0x61c   :  { %v1262_v2 = vpop.permute.xlu0 %1261 }
 0x61e   :  { %v1290_v58 = vpop.permute.xlu1 %1289 }
 0x620   :  { %v1270_v29 = vpop.permute.xlu0 %1269 }
 0x622   :  { %v4015_v15 = vpop.permute.xlu1 %1305 }
 0x624   :  { %v1278_v54 = vpop.permute.xlu0 %1277 }
 0x626   :  { %v4017_v25 = vpop.permute.xlu1 %1297 }
 0x62a   :  { %v1199_v55 = vpop.permute.xlu1 %1198 }
 0x62e   :  { %v1195_v27 = vpop.permute.xlu1 %1194 }
 0x62f   :  { %1229 = vxpose.xlu1.b32.cont [14/16] (narrow) %v1195_v27, 8 }
 0x633   :  { %1230 = vxpose.xlu1.b32.cont [15/16] (narrow) %v1197_v14, 8 }
 0x637   :  { %1231 = vxpose.xlu1.b32.end [16/16] (narrow) %v1199_v55, 8 }
 0x655   :  { %3109 = vset.pattern.permute.xlu1 %v3522_v6 }
 0x67b   :  { %v1232_v3 = vpop.trf.xlu1 }
 0x67c   :  { %v4021_v56 = vrot.slane %v1232_v3, %v3759_v22 }
 0x67e   :  { %v1316_v23 = vadd.f32 %v4021_v56, %v1250_v61  ;;  %v1317_v62 = vadd.f32 %v4021_v56, %v1254_v45  ;;  %v1318_v0 = vadd.f32 %v4021_v56, %v1258_v11  ;;  %v1319_v44 = vadd.f32 %v4021_v56, %v1262_v2 }
 0x67f   :  { %v1320_v38 = vadd.f32 %v4021_v56, %v1266_v42  ;;  %v1321_v32 = vadd.f32 %v4021_v56, %v1270_v29  ;;  %v1322_v49 = vadd.f32 %v4021_v56, %v1274_v52  ;;  %v1323_v60 = vadd.f32 %v4021_v56, %v1278_v54  ;;  %v1286_v42 = vpop.permute.xlu0 %1285 }
 0x680   :  { %v1332_v28 = vmul.f32 0.2, %v1316_v23  ;;  %v1333_v63 = vmul.f32 0.2, %v1317_v62  ;;  %v1334_v8 = vmul.f32 0.2, %v1318_v0  ;;  %v1324_v11 = vadd.f32 %v4021_v56, %v1282_v50 }
 0x681   :  { %v1335_v12 = vmul.f32 0.2, %v1319_v44  ;;  %v1336_v9 = vmul.f32 0.2, %v1320_v38  ;;  %v1337_v18 = vmul.f32 0.2, %v1321_v32  ;;  %v1325_v3 = vadd.f32 %v4021_v56, %v1286_v42 }
 0x682   :  { %v1348_v24 = vmax.f32 %v1316_v23, %v1332_v28  ;;  %v1349_v36 = vmax.f32 %v1317_v62, %v1333_v63  ;;  %v1350_v21 = vmax.f32 %v1318_v0, %v1334_v8  ;;  %v1338_v48 = vmul.f32 0.2, %v1322_v49 }
 0x683   :  { %v1351_v31 = vmax.f32 %v1319_v44, %v1335_v12  ;;  %v1352_v37 = vmax.f32 %v1320_v38, %v1336_v9  ;;  %v1353_v13 = vmax.f32 %v1321_v32, %v1337_v18  ;;  %v1339_v45 = vmul.f32 0.2, %v1323_v60  ;;  %v1294_v61 = vpop.permute.xlu0 %1293 }
 0x684   :  { %v4027_v4 = vadd.f32 %v3766_v30, %v1348_v24  ;;  %v4032_v19 = vadd.f32 %v3769_v35, %v1349_v36  ;;  %v4037_v40 = vadd.f32 %v3776_v41, %v1350_v21  ;;  %v1354_v39 = vmax.f32 %v1322_v49, %v1338_v48 }
 0x685   :  { %v4042_v33 = vadd.f32 %v3783_v47, %v1351_v31  ;;  %v4047_v46 = vadd.f32 %v3790_v53, %v1352_v37  ;;  %v4052_v14 = vadd.f32 %v3797_v59, %v1353_v13  ;;  %v1355_v55 = vmax.f32 %v1323_v60, %v1339_v45 }
 0x686   :  { %1380 = vmax.xlane.f32.xlu0 %v4027_v4  ;;  %v4057_v52 = vadd.f32 %v3804_v1, %v1354_v39  ;;  %v1340_v27 = vmul.f32 0.2, %v1324_v11  ;;  %v1341_v28 = vmul.f32 0.2, %v1325_v3  ;;  %v1326_v50 = vadd.f32 %v4021_v56, %v1290_v58 }
 0x687   :  { %v4062_v23 = vadd.f32 %v3812_v7, %v1355_v55  ;;  %v1327_v2 = vadd.f32 %v4021_v56, %v1294_v61  ;;  %v1310_v36 = vpop.permute.xlu0 %1309  ;;  %v1328_v58 = vadd.f32 %v4021_v56, %v4017_v25  ;;  %v1330_v25 = vadd.f32 %v4021_v56, %v4015_v15 }
 0x688   :  { %v1356_v62 = vmax.f32 %v1324_v11, %v1340_v27  ;;  %v1357_v0 = vmax.f32 %v1325_v3, %v1341_v28  ;;  %v1342_v24 = vmul.f32 0.2, %v1326_v50  ;;  %v1331_v48 = vadd.f32 %v4021_v56, %v1310_v36 }
 0x689   :  { %v1343_v21 = vmul.f32 0.2, %v1327_v2  ;;  %v1344_v31 = vmul.f32 0.2, %v1328_v58  ;;  %v1346_v13 = vmul.f32 0.2, %v1330_v25 }
 0x68a   :  { %1382 = vmax.xlane.f32.xlu0 %v4032_v19  ;;  %v4067_v63 = vadd.f32 %v3819_v20, %v1356_v62  ;;  %v4072_v8 = vadd.f32 %v3827_v26, %v1357_v0  ;;  %v1358_v44 = vmax.f32 %v1326_v50, %v1342_v24  ;;  %v1347_v45 = vmul.f32 0.2, %v1331_v48 }
 0x68b   :  { %v1302_v12 = vpop.permute.xlu0 %1301  ;;  %v1359_v29 = vmax.f32 %v1327_v2, %v1343_v21  ;;  %v1360_v37 = vmax.f32 %v1328_v58, %v1344_v31  ;;  %v1362_v39 = vmax.f32 %v1330_v25, %v1346_v13 }
 0x68c   :  { %v4078_v38 = vadd.f32 %v3834_v34, %v1358_v44  ;;  %v1329_v9 = vadd.f32 %v4021_v56, %v1302_v12  ;;  %v1363_v11 = vmax.f32 %v1331_v48, %v1347_v45 }
 0x68d   :  { %v4083_v32 = vadd.f32 %v3842_v43, %v1359_v29  ;;  %v4089_v49 = vadd.f32 %v3849_v51, %v1360_v37  ;;  %v4098_v15 = vadd.f32 %v3867_v5, %v1362_v39 }
 0x68e   :  { %1384 = vmax.xlane.f32.xlu0 %v4037_v40  ;;  %v1345_v18 = vmul.f32 0.2, %v1329_v9  ;;  %v4102_v42 = vadd.f32 %v3873_v10, %v1363_v11 }
 0x690   :  { %v1361_v54 = vmax.f32 %v1329_v9, %v1345_v18 }
 0x692   :  { %1386 = vmax.xlane.f32.xlu0 %v4042_v33  ;;  %v4094_v60 = vadd.f32 %v3857_v57, %v1361_v54 }
 0x696   :  { %1388 = vmax.xlane.f32.xlu0 %v4047_v46 }
 0x69a   :  { %1390 = vmax.xlane.f32.xlu0 %v4052_v14 }
 0x69e   :  { %1392 = vmax.xlane.f32.xlu0 %v4057_v52 }
 0x6a2   :  { %1394 = vmax.xlane.f32.xlu0 %v4062_v23 }
 0x6a6   :  { %1396 = vmax.xlane.f32.xlu0 %v4067_v63 }
 0x6aa   :  { %1398 = vmax.xlane.f32.xlu0 %v4072_v8 }
 0x6ae   :  { %1400 = vmax.xlane.f32.xlu0 %v4078_v38 }
 0x6b2   :  { %1402 = vmax.xlane.f32.xlu0 %v4083_v32 }
 0x6b6   :  { %1404 = vmax.xlane.f32.xlu0 %v4089_v49 }
 0x6ba   :  { %1406 = vmax.xlane.f32.xlu0 %v4094_v60 }
 0x6be   :  { %1408 = vmax.xlane.f32.xlu0 %v4098_v15 }
 0x6c2   :  { %1410 = vmax.xlane.f32.xlu0 %v4102_v42 }
 0x713   :  { %v1381_v56 = vpop.xlane.xlu0 %1380 }
 0x714   :  { %v1412_v55 = vsub.f32 %v4027_v4, %v1381_v56 }
 0x716   :  { %v1428_v27 = vmul.f32 1.442695, %v1412_v55 }
 0x717   :  { %v1383_v3 = vpop.xlane.xlu0 %1382 }
 0x718   :  { %v1413_v61 = vsub.f32 %v4032_v19, %v1383_v3  ;;  %3218 = vpow2.f32 %v1428_v27 }
 0x71a   :  { %v1430_v62 = vmul.f32 1.442695, %v1413_v61 }
 0x71b   :  { %v1385_v28 = vpop.xlane.xlu0 %1384 }
 0x71c   :  { %3220 = vpow2.f32 %v1430_v62  ;;  %v1414_v50 = vsub.f32 %v4037_v40, %v1385_v28 }
 0x71e   :  { %v1432_v0 = vmul.f32 1.442695, %v1414_v50 }
 0x71f   :  { %v1387_v24 = vpop.xlane.xlu0 %1386 }
 0x720   :  { %v1415_v2 = vsub.f32 %v4042_v33, %v1387_v24  ;;  %3222 = vpow2.f32 %v1432_v0 }
 0x722   :  { %v1434_v36 = vmul.f32 1.442695, %v1415_v2  ;;  %v3219_v21 = vpop.eup %3218 }
 0x723   :  { %v1389_v44 = vpop.xlane.xlu0 %1388 }
 0x724   :  { %3224 = vpow2.f32 %v1434_v36  ;;  %v1416_v4 = vsub.f32 %v4047_v46, %v1389_v44 }
 0x726   :  { %v3221_v58 = vpop.eup %3220  ;;  %v1436_v12 = vmul.f32 1.442695, %v1416_v4 }
 0x727   :  { %v1391_v19 = vpop.xlane.xlu0 %1390  ;;  %v1460_v29 = vpack.c.bf16 %v3221_v58, %v3219_v21 }
 0x728   :  { %v1417_v31 = vsub.f32 %v4052_v14, %v1391_v19  ;;  %3226 = vpow2.f32 %v1436_v12 }
 0x729   :  { %2960 = vmatprep.mubr.bf16.mxu1 %v1460_v29 }
 0x72a   :  { %v1438_v9 = vmul.f32 1.442695, %v1417_v31  ;;  %v3223_v37 = vpop.eup %3222 }
 0x72b   :  { %v1393_v40 = vpop.xlane.xlu0 %1392 }
 0x72c   :  { %3228 = vpow2.f32 %v1438_v9  ;;  %v1418_v33 = vsub.f32 %v4057_v52, %v1393_v40 }
 0x72e   :  { %v3225_v18 = vpop.eup %3224  ;;  %v1440_v25 = vmul.f32 1.442695, %v1418_v33 }
 0x72f   :  { %v1395_v54 = vpop.xlane.xlu0 %1394  ;;  %v1461_v13 = vpack.c.bf16 %v3225_v18, %v3223_v37 }
 0x730   :  { %v1419_v46 = vsub.f32 %v4062_v23, %v1395_v54  ;;  %3230 = vpow2.f32 %v1440_v25 }
 0x731   :  { %2961 = vmatmul.mubr.bf16.vlgmr.msra.gmra.mrb[16].mxu1 %v1461_v13 }
 0x732   :  { %v1442_v48 = vmul.f32 1.442695, %v1419_v46  ;;  %v3227_v45 = vpop.eup %3226 }
 0x733   :  { %v1397_v39 = vpop.xlane.xlu0 %1396 }
 0x734   :  { %3232 = vpow2.f32 %v1442_v48  ;;  %v1420_v14 = vsub.f32 %v4067_v63, %v1397_v39  ;;  %v3139_v39 = vld [vmem:[#allocation10 + $0x8] sm:$0xff]  }
 0x736   :  { %v3229_v11 = vpop.eup %3228  ;;  %v1444_v56 = vmul.f32 1.442695, %v1420_v14  ;;  %v3140_v14 = vld [vmem:[#allocation10 + $0x10] sm:$0xff]  }
 0x737   :  { %v1399_v55 = vpop.xlane.xlu0 %1398  ;;  %v1462_v27 = vpack.c.bf16 %v3229_v11, %v3227_v45  ;;  %v3142_v45 = vld [vmem:[#allocation10 + $0x20] sm:$0xff]  }
 0x738   :  { %v1421_v52 = vsub.f32 %v4072_v8, %v1399_v55  ;;  %3234 = vpow2.f32 %v1444_v56 }
 0x739   :  { %2964 = vmatprep.mubr.bf16.mxu1 %v1462_v27 }
 0x73a   :  { %v1446_v3 = vmul.f32 1.442695, %v1421_v52  ;;  %v3231_v62 = vpop.eup %3230 }
 0x73b   :  { %v1401_v61 = vpop.xlane.xlu0 %1400 }
 0x73c   :  { %3236 = vpow2.f32 %v1446_v3  ;;  %v1422_v23 = vsub.f32 %v4078_v38, %v1401_v61 }
 0x73e   :  { %v3233_v28 = vpop.eup %3232  ;;  %v1448_v50 = vmul.f32 1.442695, %v1422_v23  ;;  %v3143_v23 = vld [vmem:[#allocation10 + $0x28] sm:$0xff]  }
 0x73f   :  { %v1403_v0 = vpop.xlane.xlu0 %1402  ;;  %v1463_v24 = vpack.c.bf16 %v3233_v28, %v3231_v62 }
 0x740   :  { %v1423_v63 = vsub.f32 %v4083_v32, %v1403_v0  ;;  %3238 = vpow2.f32 %v1448_v50  ;;  %v3144_v0 = vld [vmem:[#allocation10 + $0x30] sm:$0xff]  }
 0x741   :  { %2965 = vmatmul.mubr.bf16.gmra.mrb[20].mxu1 %v1463_v24 }
 0x742   :  { %v1450_v2 = vmul.f32 1.442695, %v1423_v63  ;;  %v3235_v44 = vpop.eup %3234 }
 0x743   :  { %v1405_v36 = vpop.xlane.xlu0 %1404 }
 0x744   :  { %3240 = vpow2.f32 %v1450_v2  ;;  %v1424_v8 = vsub.f32 %v4089_v49, %v1405_v36  ;;  %v3145_v2 = vld [vmem:[#allocation10 + $0x38] sm:$0xff]  }
 0x746   :  { %v3237_v4 = vpop.eup %3236  ;;  %v1452_v21 = vmul.f32 1.442695, %v1424_v8 }
 0x747   :  { %v1407_v58 = vpop.xlane.xlu0 %1406  ;;  %v1464_v12 = vpack.c.bf16 %v3237_v4, %v3235_v44 }
 0x748   :  { %v1425_v38 = vsub.f32 %v4094_v60, %v1407_v58  ;;  %3242 = vpow2.f32 %v1452_v21 }
 0x749   :  { %2968 = vmatprep.mubr.bf16.mxu1 %v1464_v12 }
 0x74a   :  { %v1454_v19 = vmul.f32 1.442695, %v1425_v38  ;;  %v3239_v31 = vpop.eup %3238 }
 0x74b   :  { %v1409_v29 = vpop.xlane.xlu0 %1408 }
 0x74c   :  { %3244 = vpow2.f32 %v1454_v19  ;;  %v1426_v32 = vsub.f32 %v4098_v15, %v1409_v29  ;;  %v3138_v15 = vld [vmem:[#allocation10] sm:$0xff]  }
 0x74d   :  { %2976 = vmatprep.subr.bf16.mxu0 %v3138_v15 }
 0x74e   :  { %v3241_v9 = vpop.eup %3240  ;;  %v1456_v40 = vmul.f32 1.442695, %v1426_v32  ;;  %2977 = vmatpush3.bf16.msra.mxu0 %v3138_v15 }
 0x74f   :  { %v1411_v33 = vpop.xlane.xlu0 %1410  ;;  %v1465_v37 = vpack.c.bf16 %v3241_v9, %v3239_v31  ;;  %2978 = vmatprep.subr.bf16.mxu0 %v3139_v39 }
 0x750   :  { %v1427_v49 = vsub.f32 %v4102_v42, %v1411_v33  ;;  %3246 = vpow2.f32 %v1456_v40  ;;  %v3141_v42 = vld [vmem:[#allocation10 + $0x18] sm:$0xff]  }
 0x751   :  { %2969 = vmatmul.mubr.bf16.gmra.mrb[24].mxu1 %v1465_v37 }
 0x752   :  { %v1458_v18 = vmul.f32 1.442695, %v1427_v49  ;;  %v3243_v25 = vpop.eup %3242  ;;  %2979 = vmatpush3.bf16.msra.mxu0 %v3139_v39 }
 0x753   :  { %2980 = vmatprep.subr.bf16.mxu0 %v3140_v14 }
 0x754   :  { %3248 = vpow2.f32 %v1458_v18 }
 0x756   :  { %v3245_v60 = vpop.eup %3244  ;;  %2981 = vmatpush3.bf16.msra.mxu0 %v3140_v14 }
 0x757   :  { %v1466_v54 = vpack.c.bf16 %v3245_v60, %v3243_v25  ;;  %2982 = vmatprep.subr.bf16.mxu0 %v3141_v42 }
 0x759   :  { %2972 = vmatprep.mubr.bf16.mxu1 %v1466_v54 }
 0x75a   :  { %v3247_v13 = vpop.eup %3246  ;;  %2983 = vmatpush3.bf16.msra.mxu0 %v3141_v42 }
 0x75b   :  { %2984 = vmatprep.subr.bf16.mxu0 %v3142_v45 }
 0x75e   :  { %v3249_v46 = vpop.eup %3248  ;;  %2985 = vmatpush3.bf16.msra.mxu0 %v3142_v45 }
 0x75f   :  { %v1467_v48 = vpack.c.bf16 %v3249_v46, %v3247_v13  ;;  %2986 = vmatprep.subr.bf16.mxu0 %v3143_v23 }
 0x761   :  { %2973 = vmatmul.mubr.bf16.gmra.mrb[28].mxu1 %v1467_v48  ;;  %v2678_v48 = vld [vmem:[%s4424_s6] ss:$0 sm:$0xff] }
 0x762   :  { %2987 = vmatpush3.bf16.msra.mxu0 %v3143_v23 }
 0x763   :  { %2988 = vmatprep.subr.bf16.mxu0 %v3144_v0 }
 0x766   :  { %2989 = vmatpush3.bf16.msra.mxu0 %v3144_v0 }
 0x767   :  { %2990 = vmatprep.subr.bf16.mxu0 %v3145_v2 }
 0x76a   :  { %2991 = vmatpush3.bf16.msra.mxu0 %v3145_v2 }
 0x804   :  { %v4121_v11 = vpop.f32.mrb[16].mxu1 }
 0x805   :  { %3250 = vrcp.f32 %v4121_v11  ;;  %v4124_v56 = vpop.f32.mrb[17].mxu1 }
 0x806   :  { %3252 = vrcp.f32 %v4124_v56  ;;  %v4127_v55 = vpop.f32.mrb[18].mxu1 }
 0x807   :  { %v4129_v27 = vpop.f32.mrb[19].mxu1 }
 0x808   :  { %3254 = vrcp.f32 %v4129_v27 }
 0x809   :  { %3256 = vrcp.f32 %v4127_v55 }
 0x80f   :  { %v3251_v52 = vpop.eup %3250 }
 0x810   :  { %v3253_v3 = vpop.eup %3252  ;;  %1593 = vperm.xlu1 %3109, %v3251_v52  }
 0x811   :  { %1583 = vperm.xlu0 %3108, %v3253_v3  }
 0x812   :  { %v3255_v61 = vpop.eup %3254 }
 0x813   :  { %v3257_v24 = vpop.eup %3256 }
 0x814   :  { %1588 = vperm.xlu1 %3109, %v3255_v61   ;;  %v4133_v62 = vpop.f32.mrb[20].mxu1 }
 0x815   :  { %v4135_v28 = vpop.f32.mrb[21].mxu1 }
 0x816   :  { %3258 = vrcp.f32 %v4135_v28  ;;  %v4138_v50 = vpop.f32.mrb[22].mxu1 }
 0x817   :  { %v4140_v63 = vpop.f32.mrb[23].mxu1 }
 0x818   :  { %3260 = vrcp.f32 %v4140_v63  ;;  %1598 = vperm.xlu1 %3109, %v3257_v24  }
 0x819   :  { %3262 = vrcp.f32 %v4133_v62 }
 0x81a   :  { %3264 = vrcp.f32 %v4138_v50 }
 0x820   :  { %v3259_v36 = vpop.eup %3258 }
 0x821   :  { %1603 = vperm.xlu0 %3108, %v3259_v36  }
 0x822   :  { %v3261_v8 = vpop.eup %3260 }
 0x823   :  { %1608 = vperm.xlu1 %3109, %v3261_v8   ;;  %v3263_v44 = vpop.eup %3262 }
 0x824   :  { %v4145_v4 = vpop.f32.mrb[24].mxu1  ;;  %v3265_v58 = vpop.eup %3264 }
 0x825   :  { %1613 = vperm.xlu0 %3108, %v3263_v44   ;;  %v4147_v21 = vpop.f32.mrb[25].mxu1 }
 0x826   :  { %3266 = vrcp.f32 %v4147_v21  ;;  %v4150_v12 = vpop.f32.mrb[26].mxu1 }
 0x827   :  { %1618 = vperm.xlu1 %3109, %v3265_v58   ;;  %v4152_v38 = vpop.f32.mrb[27].mxu1 }
 0x828   :  { %3268 = vrcp.f32 %v4152_v38 }
 0x829   :  { %3270 = vrcp.f32 %v4145_v4 }
 0x82a   :  { %3272 = vrcp.f32 %v4150_v12 }
 0x830   :  { %v3267_v19 = vpop.eup %3266 }
 0x831   :  { %1623 = vperm.xlu0 %3108, %v3267_v19  }
 0x832   :  { %v3269_v29 = vpop.eup %3268 }
 0x833   :  { %1628 = vperm.xlu1 %3109, %v3269_v29   ;;  %v3271_v32 = vpop.eup %3270 }
 0x834   :  { %v4157_v31 = vpop.f32.mrb[28].mxu1  ;;  %v3273_v40 = vpop.eup %3272 }
 0x835   :  { %1633 = vperm.xlu0 %3108, %v3271_v32   ;;  %v4159_v9 = vpop.f32.mrb[29].mxu1 }
 0x836   :  { %3274 = vrcp.f32 %v4159_v9  ;;  %v4162_v33 = vpop.f32.mrb[30].mxu1 }
 0x837   :  { %1638 = vperm.xlu1 %3109, %v3273_v40   ;;  %v4164_v37 = vpop.f32.mrb[31].mxu1 }
 0x838   :  { %3276 = vrcp.f32 %v4164_v37 }
 0x839   :  { %3278 = vrcp.f32 %v4157_v31 }
 0x83a   :  { %3280 = vrcp.f32 %v4162_v33 }
 0x840   :  { %v3275_v49 = vpop.eup %3274 }
 0x841   :  { %1643 = vperm.xlu0 %3108, %v3275_v49  }
 0x842   :  { %v3277_v18 = vpop.eup %3276 }
 0x843   :  { %1648 = vperm.xlu1 %3109, %v3277_v18   ;;  %v3279_v25 = vpop.eup %3278 }
 0x844   :  { %v3281_v60 = vpop.eup %3280 }
 0x845   :  { %1653 = vperm.xlu0 %3108, %v3279_v25  }
 0x847   :  { %1658 = vperm.xlu1 %3109, %v3281_v60  }
 0x849   :  { %3110 = vset.pattern.permute.xlu0 %v3520_v16 }
 0x84b   :  { %3111 = vset.pattern.permute.xlu1 %v3520_v16 }
 0x88f   :  { %v1594_v54 = vpop.permute.xlu1 %1593 }
 0x890   :  { %v1584_v13 = vpop.permute.xlu0 %1583  ;;  %v1663_v14 = vmul.f32 %v4121_v11, %v1594_v54 }
 0x891   :  { %v1661_v46 = vmul.f32 %v1584_v13, %v4124_v56 }
 0x892   :  { %v1685_v16 = vadd.f32 %v2678_v48, %v1663_v14 }
 0x893   :  { %v1589_v15 = vpop.permute.xlu1 %1588  ;;  %v1683_v42 = vadd.f32 %v2678_v48, %v1661_v46 }
 0x894   :  { %v1662_v39 = vmul.f32 %v1589_v15, %v4129_v27 }
 0x896   :  { %v1684_v45 = vadd.f32 %v2678_v48, %v1662_v39 }
 0x897   :  { %v1599_v52 = vpop.permute.xlu1 %1598 }
 0x898   :  { %v1664_v3 = vmul.f32 %v4127_v55, %v1599_v52  ;;  %v1699_v61 = vpack.c.bf16 %v1684_v45, %v1683_v42 }
 0x89a   :  { %v1686_v23 = vadd.f32 %v2678_v48, %v1664_v3  ;;  %2992 = vmatprep.mubr.bf16.mxu0 %v1699_v61 }
 0x89c   :  { %v1700_v0 = vpack.c.bf16 %v1686_v23, %v1685_v16 }
 0x89e   :  { %2993 = vmatmul.mubr.bf16.vlgmr.msra.gmra.mrb[32].mxu0 %v1700_v0 }
 0x8a0   :  { %v1604_v56 = vpop.permute.xlu0 %1603 }
 0x8a1   :  { %v1665_v24 = vmul.f32 %v1604_v56, %v4135_v28 }
 0x8a2   :  { %v1609_v2 = vpop.permute.xlu1 %1608 }
 0x8a3   :  { %v1666_v36 = vmul.f32 %v1609_v2, %v4140_v63  ;;  %v1687_v8 = vadd.f32 %v2678_v48, %v1665_v24 }
 0x8a4   :  { %v1614_v27 = vpop.permute.xlu0 %1613 }
 0x8a5   :  { %v1688_v11 = vadd.f32 %v2678_v48, %v1666_v36  ;;  %v1667_v44 = vmul.f32 %v4133_v62, %v1614_v27 }
 0x8a6   :  { %v1619_v58 = vpop.permute.xlu1 %1618 }
 0x8a7   :  { %v1668_v55 = vmul.f32 %v4138_v50, %v1619_v58  ;;  %v1701_v19 = vpack.c.bf16 %v1688_v11, %v1687_v8  ;;  %v1689_v29 = vadd.f32 %v2678_v48, %v1667_v44 }
 0x8a9   :  { %v1690_v32 = vadd.f32 %v2678_v48, %v1668_v55  ;;  %2996 = vmatprep.mubr.bf16.mxu0 %v1701_v19 }
 0x8ab   :  { %v1702_v40 = vpack.c.bf16 %v1690_v32, %v1689_v29 }
 0x8ad   :  { %2997 = vmatmul.mubr.bf16.gmra.mrb[36].mxu0 %v1702_v40 }
 0x8b0   :  { %v1624_v49 = vpop.permute.xlu0 %1623 }
 0x8b1   :  { %v1669_v28 = vmul.f32 %v1624_v49, %v4147_v21 }
 0x8b2   :  { %v1629_v18 = vpop.permute.xlu1 %1628 }
 0x8b3   :  { %v1670_v63 = vmul.f32 %v1629_v18, %v4152_v38  ;;  %v1691_v60 = vadd.f32 %v2678_v48, %v1669_v28 }
 0x8b4   :  { %v1634_v25 = vpop.permute.xlu0 %1633 }
 0x8b5   :  { %v1692_v54 = vadd.f32 %v2678_v48, %v1670_v63  ;;  %v1671_v62 = vmul.f32 %v4145_v4, %v1634_v25 }
 0x8b6   :  { %v1639_v13 = vpop.permute.xlu1 %1638 }
 0x8b7   :  { %v1672_v50 = vmul.f32 %v4150_v12, %v1639_v13  ;;  %v1703_v46 = vpack.c.bf16 %v1692_v54, %v1691_v60  ;;  %v1693_v15 = vadd.f32 %v2678_v48, %v1671_v62 }
 0x8b9   :  { %v1694_v39 = vadd.f32 %v2678_v48, %v1672_v50  ;;  %3000 = vmatprep.mubr.bf16.mxu0 %v1703_v46 }
 0x8bb   :  { %v1704_v14 = vpack.c.bf16 %v1694_v39, %v1693_v15 }
 0x8bd   :  { %3001 = vmatmul.mubr.bf16.gmra.mrb[40].mxu0 %v1704_v14 }
 0x8c0   :  { %v1644_v42 = vpop.permute.xlu0 %1643 }
 0x8c1   :  { %v1673_v21 = vmul.f32 %v1644_v42, %v4159_v9 }
 0x8c2   :  { %v1649_v45 = vpop.permute.xlu1 %1648 }
 0x8c3   :  { %v1674_v38 = vmul.f32 %v1649_v45, %v4164_v37  ;;  %v1695_v3 = vadd.f32 %v2678_v48, %v1673_v21 }
 0x8c4   :  { %v1654_v52 = vpop.permute.xlu0 %1653 }
 0x8c5   :  { %v1696_v61 = vadd.f32 %v2678_v48, %v1674_v38  ;;  %v1675_v4 = vmul.f32 %v4157_v31, %v1654_v52 }
 0x8c6   :  { %v1659_v16 = vpop.permute.xlu1 %1658 }
 0x8c7   :  { %v1676_v12 = vmul.f32 %v4162_v33, %v1659_v16  ;;  %v1705_v23 = vpack.c.bf16 %v1696_v61, %v1695_v3  ;;  %v1697_v0 = vadd.f32 %v2678_v48, %v1675_v4  ;;  %v3347_v3 = vld [vmem:[%s4420_s2] ss:$0 sm:$0xff] }
 0x8c9   :  { %v1698_v56 = vadd.f32 %v2678_v48, %v1676_v12  ;;  %3004 = vmatprep.mubr.bf16.mxu0 %v1705_v23 }
 0x8cb   :  { %v1706_v24 = vpack.c.bf16 %v1698_v56, %v1697_v0 }
 0x8cd   :  { %3005 = vmatmul.mubr.bf16.gmra.mrb[44].mxu0 %v1706_v24 }
 0x971   :  { %v2994_v2 = vpop.f32.mrb[32].mxu0 }
 0x972   :  { %1913 = vrot.lane.b32.xlu0 %v2994_v2, %s3521_s30  ;;  %v4191_v9 = vpop.f32.mrb[33].mxu0  ;;  %v1871_v36 = vadd.f32 %v3987_v17, %v2994_v2 }
 0x973   :  { %v4193_v37 = vpop.f32.mrb[34].mxu0  ;;  %v1869_v48 = vadd.f32 %v3987_v17, %v4191_v9 }
 0x974   :  { %v1872_v31 = vadd.f32 %v3987_v17, %v4193_v37  ;;  %1915 = vrot.lane.b32.xlu1 %v4193_v37, %s3521_s30  ;;  %v1809_v33 = vpop.f32.mrb[35].mxu0 }
 0x975   :  { %v1870_v27 = vadd.f32 %v3987_v17, %v1809_v33 }
 0x976   :  { %1909 = vrot.lane.b32.xlu0 %v4191_v9, %s3521_s30  ;;  %v1886_v8 = vpack.c.bf16 %v1872_v31, %v1871_v36 }
 0x977   :  { %v1885_v11 = vpack.c.bf16 %v1870_v27, %v1869_v48 }
 0x978   :  { %1911 = vrot.lane.b32.xlu1 %v1809_v33, %s3521_s30 }
 0x979   :  { %3008 = vmatprep.subr.bf16.mxu1 %v1885_v11 }
 0x97a   :  { %3009 = vmatpush3.bf16.msra.mxu1 %v1885_v11 }
 0x97b   :  { %3010 = vmatprep.subr.bf16.mxu1 %v1886_v8 }
 0x97e   :  { %3011 = vmatpush3.bf16.msra.mxu1 %v1886_v8 }
 0x980   :  { %v2998_v44 = vpop.f32.mrb[36].mxu0 }
 0x981   :  { %1921 = vrot.lane.b32.xlu0 %v2998_v44, %s3521_s30  ;;  %v1822_v58 = vpop.f32.mrb[37].mxu0  ;;  %v1875_v19 = vadd.f32 %v3987_v17, %v2998_v44 }
 0x982   :  { %v2999_v55 = vpop.f32.mrb[38].mxu0  ;;  %v1873_v40 = vadd.f32 %v3987_v17, %v1822_v58 }
 0x983   :  { %v1876_v29 = vadd.f32 %v3987_v17, %v2999_v55  ;;  %1923 = vrot.lane.b32.xlu1 %v2999_v55, %s3521_s30  ;;  %v1825_v32 = vpop.f32.mrb[39].mxu0 }
 0x984   :  { %v1874_v49 = vadd.f32 %v3987_v17, %v1825_v32 }
 0x985   :  { %1917 = vrot.lane.b32.xlu0 %v1822_v58, %s3521_s30  ;;  %v1888_v28 = vpack.c.bf16 %v1876_v29, %v1875_v19 }
 0x986   :  { %v1887_v18 = vpack.c.bf16 %v1874_v49, %v1873_v40 }
 0x987   :  { %1919 = vrot.lane.b32.xlu1 %v1825_v32, %s3521_s30 }
 0x988   :  { %3012 = vmatprep.subr.bf16.mxu1 %v1887_v18 }
 0x989   :  { %3013 = vmatpush3.bf16.msra.mxu1 %v1887_v18 }
 0x98a   :  { %3014 = vmatprep.subr.bf16.mxu1 %v1888_v28 }
 0x98d   :  { %3015 = vmatpush3.bf16.msra.mxu1 %v1888_v28 }
 0x990   :  { %v3002_v63 = vpop.f32.mrb[40].mxu0 }
 0x991   :  { %1929 = vrot.lane.b32.xlu0 %v3002_v63, %s3521_s30  ;;  %v1838_v25 = vpop.f32.mrb[41].mxu0  ;;  %v1879_v54 = vadd.f32 %v3987_v17, %v3002_v63 }
 0x992   :  { %v3003_v60 = vpop.f32.mrb[42].mxu0  ;;  %v1877_v50 = vadd.f32 %v3987_v17, %v1838_v25 }
 0x993   :  { %v1880_v62 = vadd.f32 %v3987_v17, %v3003_v60  ;;  %1931 = vrot.lane.b32.xlu1 %v3003_v60, %s3521_s30  ;;  %v1841_v13 = vpop.f32.mrb[43].mxu0 }
 0x994   :  { %v1878_v46 = vadd.f32 %v3987_v17, %v1841_v13 }
 0x995   :  { %1925 = vrot.lane.b32.xlu0 %v1838_v25, %s3521_s30  ;;  %v1890_v15 = vpack.c.bf16 %v1880_v62, %v1879_v54 }
 0x996   :  { %v1889_v39 = vpack.c.bf16 %v1878_v46, %v1877_v50 }
 0x997   :  { %1927 = vrot.lane.b32.xlu1 %v1841_v13, %s3521_s30 }
 0x998   :  { %3016 = vmatprep.subr.bf16.mxu1 %v1889_v39 }
 0x999   :  { %3017 = vmatpush3.bf16.msra.mxu1 %v1889_v39 }
 0x99a   :  { %3018 = vmatprep.subr.bf16.mxu1 %v1890_v15 }
 0x99b   :  { %1994 = vperm.xlu1 %3111, %v1809_v33  }
 0x99d   :  { %3019 = vmatpush3.bf16.msra.mxu1 %v1890_v15 }
 0x99f   :  { %1998 = vperm.xlu1 %3111, %v2994_v2  }
 0x9a0   :  { %v3006_v14 = vpop.f32.mrb[44].mxu0 }
 0x9a1   :  { %1937 = vrot.lane.b32.xlu0 %v3006_v14, %s3521_s30  ;;  %v1854_v42 = vpop.f32.mrb[45].mxu0  ;;  %v1883_v45 = vadd.f32 %v3987_v17, %v3006_v14 }
 0x9a2   :  { %v3007_v21 = vpop.f32.mrb[46].mxu0  ;;  %v1881_v61 = vadd.f32 %v3347_v3, %v1854_v42 }
 0x9a3   :  { %v1884_v38 = vadd.f32 %v3987_v17, %v3007_v21  ;;  %2006 = vperm.xlu1 %3111, %v1822_v58   ;;  %v1857_v52 = vpop.f32.mrb[47].mxu0 }
 0x9a4   :  { %v1882_v4 = vadd.f32 %v3347_v3, %v1857_v52 }
 0x9a5   :  { %1933 = vrot.lane.b32.xlu0 %v1854_v42, %s3521_s30  ;;  %v1892_v16 = vpack.c.bf16 %v1884_v38, %v1883_v45 }
 0x9a6   :  { %v1891_v12 = vpack.c.bf16 %v1882_v4, %v1881_v61 }
 0x9a7   :  { %2014 = vperm.xlu1 %3111, %v2998_v44  }
 0x9a8   :  { %3020 = vmatprep.subr.bf16.mxu1 %v1891_v12 }
 0x9a9   :  { %1990 = vperm.xlu0 %3110, %v4191_v9   ;;  %3021 = vmatpush3.bf16.msra.mxu1 %v1891_v12 }
 0x9aa   :  { %3022 = vmatprep.subr.bf16.mxu1 %v1892_v16 }
 0x9ab   :  { %2022 = vperm.xlu1 %3111, %v1838_v25  }
 0x9ad   :  { %2002 = vperm.xlu0 %3110, %v4193_v37   ;;  %3023 = vmatpush3.bf16.msra.mxu1 %v1892_v16 }
 0x9af   :  { %2030 = vperm.xlu1 %3111, %v3002_v63  }
 0x9b1   :  { %2010 = vperm.xlu0 %3110, %v1825_v32  }
 0x9b3   :  { %2046 = vperm.xlu1 %3111, %v3006_v14  }
 0x9b5   :  { %2018 = vperm.xlu0 %3110, %v2999_v55  }
 0x9b7   :  { %2038 = vperm.xlu1 %3111, %v1854_v42  }
 0x9b9   :  { %2026 = vperm.xlu0 %3110, %v1841_v13  }
 0x9bb   :  { %1939 = vrot.lane.b32.xlu1 %v3007_v21, %s3521_s30 }
 0x9bd   :  { %2034 = vperm.xlu0 %3110, %v3003_v60  }
 0x9bf   :  { %1935 = vrot.lane.b32.xlu1 %v1857_v52, %s3521_s30 }
 0x9c1   :  { %2050 = vperm.xlu0 %3110, %v3007_v21  }
 0x9c5   :  { %2042 = vperm.xlu0 %3110, %v1857_v52  }
 0x9c9   :  { %3112 = vset.pattern.permute.xlu0 %v3522_v6 }
 0x9e4   :  { %v1914_v17 = vpop.permute.xlu0 %1913 }
 0x9e6   :  { %v1916_v23 = vpop.permute.xlu1 %1915 }
 0x9e8   :  { %v1910_v0 = vpop.permute.xlu0 %1909 }
 0x9e9   :  { %1957 = vxpose.xlu1.b32.start [1/16] (narrow) %v1910_v0, 8 }
 0x9ea   :  { %v1912_v56 = vpop.permute.xlu1 %1911 }
 0x9ed   :  { %1958 = vxpose.xlu1.b32.cont [2/16] (narrow) %v1912_v56, 8 }
 0x9f1   :  { %1959 = vxpose.xlu1.b32.cont [3/16] (narrow) %v1914_v17, 8 }
 0x9f3   :  { %v1922_v24 = vpop.permute.xlu0 %1921 }
 0x9f5   :  { %1960 = vxpose.xlu1.b32.cont [4/16] (narrow) %v1916_v23, 8  ;;  %v1924_v2 = vpop.permute.xlu1 %1923 }
 0x9f7   :  { %v1918_v9 = vpop.permute.xlu0 %1917 }
 0x9f9   :  { %1961 = vxpose.xlu1.b32.cont [5/16] (narrow) %v1918_v9, 8  ;;  %v1920_v37 = vpop.permute.xlu1 %1919 }
 0x9fd   :  { %1962 = vxpose.xlu1.b32.cont [6/16] (narrow) %v1920_v37, 8 }
 0xa01   :  { %1963 = vxpose.xlu1.b32.cont [7/16] (narrow) %v1922_v24, 8 }
 0xa03   :  { %v1930_v36 = vpop.permute.xlu0 %1929 }
 0xa05   :  { %1964 = vxpose.xlu1.b32.cont [8/16] (narrow) %v1924_v2, 8  ;;  %v1932_v31 = vpop.permute.xlu1 %1931 }
 0xa07   :  { %v1926_v33 = vpop.permute.xlu0 %1925 }
 0xa09   :  { %1965 = vxpose.xlu1.b32.cont [9/16] (narrow) %v1926_v33, 8  ;;  %v1928_v48 = vpop.permute.xlu1 %1927 }
 0xa0d   :  { %1966 = vxpose.xlu1.b32.cont [10/16] (narrow) %v1928_v48, 8 }
 0xa11   :  { %1967 = vxpose.xlu1.b32.cont [11/16] (narrow) %v1930_v36, 8 }
 0xa13   :  { %v1938_v27 = vpop.permute.xlu0 %1937 }
 0xa15   :  { %1968 = vxpose.xlu1.b32.cont [12/16] (narrow) %v1932_v31, 8 }
 0xa17   :  { %v1934_v8 = vpop.permute.xlu0 %1933 }
 0xa19   :  { %1969 = vxpose.xlu1.b32.cont [13/16] (narrow) %v1934_v8, 8 }
 0xa1a   :  { %v1995_v11 = vpop.permute.xlu1 %1994 }
 0xa1e   :  { %v1999_v44 = vpop.permute.xlu1 %1998 }
 0xa22   :  { %v2007_v58 = vpop.permute.xlu1 %2006 }
 0xa26   :  { %v2015_v55 = vpop.permute.xlu1 %2014 }
 0xa28   :  { %v1991_v25 = vpop.permute.xlu0 %1990 }
 0xa2a   :  { %v2023_v19 = vpop.permute.xlu1 %2022 }
 0xa2c   :  { %v2003_v15 = vpop.permute.xlu0 %2002 }
 0xa2e   :  { %v2031_v29 = vpop.permute.xlu1 %2030 }
 0xa30   :  { %v2011_v52 = vpop.permute.xlu0 %2010 }
 0xa32   :  { %v4234_v32 = vpop.permute.xlu1 %2046 }
 0xa34   :  { %v2019_v23 = vpop.permute.xlu0 %2018 }
 0xa36   :  { %v4236_v40 = vpop.permute.xlu1 %2038 }
 0xa38   :  { %v2027_v36 = vpop.permute.xlu0 %2026 }
 0xa3a   :  { %v1940_v49 = vpop.permute.xlu1 %1939 }
 0xa3e   :  { %v1936_v28 = vpop.permute.xlu1 %1935 }
 0xa3f   :  { %1970 = vxpose.xlu1.b32.cont [14/16] (narrow) %v1936_v28, 8 }
 0xa43   :  { %1971 = vxpose.xlu1.b32.cont [15/16] (narrow) %v1938_v27, 8  ;;  %v2035_v27 = vpop.permute.xlu0 %2034 }
 0xa47   :  { %1972 = vxpose.xlu1.b32.end [16/16] (narrow) %v1940_v49, 8  ;;  %v2051_v49 = vpop.permute.xlu0 %2050 }
 0xa65   :  { %3113 = vset.pattern.permute.xlu1 %v3522_v6 }
 0xa8b   :  { %v1973_v18 = vpop.trf.xlu1 }
 0xa8c   :  { %v4240_v63 = vrot.slane %v1973_v18, %v3759_v22 }
 0xa8e   :  { %v2057_v60 = vadd.f32 %v4240_v63, %v1991_v25  ;;  %v2058_v54 = vadd.f32 %v4240_v63, %v1995_v11  ;;  %v2059_v50 = vadd.f32 %v4240_v63, %v1999_v44  ;;  %v2060_v42 = vadd.f32 %v4240_v63, %v2003_v15  ;;  %v2043_v25 = vpop.permute.xlu0 %2042 }
 0xa8f   :  { %v2061_v38 = vadd.f32 %v4240_v63, %v2007_v58  ;;  %v2062_v4 = vadd.f32 %v4240_v63, %v2011_v52  ;;  %v2063_v17 = vadd.f32 %v4240_v63, %v2015_v55  ;;  %v2064_v24 = vadd.f32 %v4240_v63, %v2019_v23 }
 0xa90   :  { %v2073_v62 = vmul.f32 0.2, %v2057_v60  ;;  %v2074_v13 = vmul.f32 0.2, %v2058_v54  ;;  %v2075_v6 = vmul.f32 0.2, %v2059_v50  ;;  %v2065_v37 = vadd.f32 %v4240_v63, %v2023_v19 }
 0xa91   :  { %v2076_v45 = vmul.f32 0.2, %v2060_v42  ;;  %v2077_v61 = vmul.f32 0.2, %v2061_v38  ;;  %v2078_v12 = vmul.f32 0.2, %v2062_v4  ;;  %v2066_v48 = vadd.f32 %v4240_v63, %v2027_v36 }
 0xa92   :  { %v2089_v46 = vmax.f32 %v2057_v60, %v2073_v62  ;;  %v2090_v14 = vmax.f32 %v2058_v54, %v2074_v13  ;;  %v2091_v21 = vmax.f32 %v2059_v50, %v2075_v6  ;;  %v2079_v56 = vmul.f32 0.2, %v2063_v17 }
 0xa93   :  { %v2080_v9 = vmul.f32 0.2, %v2064_v24  ;;  %v2081_v33 = vmul.f32 0.2, %v2065_v37  ;;  %v2082_v11 = vmul.f32 0.2, %v2066_v48  ;;  %v2067_v44 = vadd.f32 %v4240_v63, %v2031_v29 }
 0xa94   :  { %v4246_v39 = vadd.f32 %v3766_v30, %v2089_v46  ;;  %v4251_v22 = vadd.f32 %v3769_v35, %v2090_v14  ;;  %v4256_v3 = vadd.f32 %v3776_v41, %v2091_v21  ;;  %v2092_v30 = vmax.f32 %v2060_v42, %v2076_v45 }
 0xa95   :  { %v2093_v35 = vmax.f32 %v2061_v38, %v2077_v61  ;;  %v2094_v41 = vmax.f32 %v2062_v4, %v2078_v12  ;;  %v2097_v8 = vmax.f32 %v2065_v37, %v2081_v33  ;;  %v2083_v55 = vmul.f32 0.2, %v2067_v44 }
 0xa96   :  { %2121 = vmax.xlane.f32.xlu0 %v4246_v39  ;;  %v4261_v16 = vadd.f32 %v3783_v47, %v2092_v30  ;;  %v2095_v47 = vmax.f32 %v2063_v17, %v2079_v56  ;;  %v2068_v19 = vadd.f32 %v4240_v63, %v2035_v27  ;;  %v2069_v29 = vadd.f32 %v4240_v63, %v4236_v40 }
 0xa97   :  { %v4266_v0 = vadd.f32 %v3790_v53, %v2093_v35  ;;  %v4271_v2 = vadd.f32 %v3797_v59, %v2094_v41  ;;  %v2096_v53 = vmax.f32 %v2064_v24, %v2080_v9  ;;  %v4286_v58 = vadd.f32 %v3819_v20, %v2097_v8 }
 0xa98   :  { %v4276_v31 = vadd.f32 %v3804_v1, %v2095_v47  ;;  %v2098_v1 = vmax.f32 %v2066_v48, %v2082_v11  ;;  %v2084_v18 = vmul.f32 0.2, %v2068_v19  ;;  %v2085_v54 = vmul.f32 0.2, %v2069_v29 }
 0xa99   :  { %v4281_v59 = vadd.f32 %v3812_v7, %v2096_v53  ;;  %v2099_v7 = vmax.f32 %v2067_v44, %v2083_v55  ;;  %v2070_v62 = vadd.f32 %v4240_v63, %v2043_v25  ;;  %v2071_v40 = vadd.f32 %v4240_v63, %v4234_v32 }
 0xa9a   :  { %2123 = vmax.xlane.f32.xlu0 %v4251_v22  ;;  %v4291_v28 = vadd.f32 %v3827_v26, %v2098_v1  ;;  %v2100_v60 = vmax.f32 %v2068_v19, %v2084_v18  ;;  %v2101_v13 = vmax.f32 %v2069_v29, %v2085_v54  ;;  %v2072_v14 = vadd.f32 %v4240_v63, %v2051_v49 }
 0xa9b   :  { %v4297_v20 = vadd.f32 %v3834_v34, %v2099_v7  ;;  %v2086_v50 = vmul.f32 0.2, %v2070_v62  ;;  %v2087_v15 = vmul.f32 0.2, %v2071_v40 }
 0xa9c   :  { %v4302_v26 = vadd.f32 %v3842_v43, %v2100_v60  ;;  %v4308_v46 = vadd.f32 %v3849_v51, %v2101_v13  ;;  %v2088_v42 = vmul.f32 0.2, %v2072_v14 }
 0xa9d   :  { %v2102_v34 = vmax.f32 %v2070_v62, %v2086_v50  ;;  %v2103_v43 = vmax.f32 %v2071_v40, %v2087_v15 }
 0xa9e   :  { %2125 = vmax.xlane.f32.xlu0 %v4256_v3  ;;  %v2104_v21 = vmax.f32 %v2072_v14, %v2088_v42 }
 0xa9f   :  { %v4313_v6 = vadd.f32 %v3857_v57, %v2102_v34  ;;  %v4317_v32 = vadd.f32 %v3867_v5, %v2103_v43 }
 0xaa0   :  { %v4321_v51 = vadd.f32 %v3873_v10, %v2104_v21 }
 0xaa2   :  { %2127 = vmax.xlane.f32.xlu0 %v4261_v16 }
 0xaa6   :  { %2129 = vmax.xlane.f32.xlu0 %v4266_v0 }
 0xaaa   :  { %2131 = vmax.xlane.f32.xlu0 %v4271_v2 }
 0xaae   :  { %2133 = vmax.xlane.f32.xlu0 %v4276_v31 }
 0xab2   :  { %2135 = vmax.xlane.f32.xlu0 %v4281_v59 }
 0xab6   :  { %2137 = vmax.xlane.f32.xlu0 %v4286_v58 }
 0xaba   :  { %2139 = vmax.xlane.f32.xlu0 %v4291_v28 }
 0xabe   :  { %2141 = vmax.xlane.f32.xlu0 %v4297_v20 }
 0xac2   :  { %2143 = vmax.xlane.f32.xlu0 %v4302_v26 }
 0xac6   :  { %2145 = vmax.xlane.f32.xlu0 %v4308_v46 }
 0xaca   :  { %2147 = vmax.xlane.f32.xlu0 %v4313_v6 }
 0xace   :  { %2149 = vmax.xlane.f32.xlu0 %v4317_v32 }
 0xad2   :  { %2151 = vmax.xlane.f32.xlu0 %v4321_v51 }
 0xb23   :  { %v2122_v63 = vpop.xlane.xlu0 %2121 }
 0xb24   :  { %v2153_v45 = vsub.f32 %v4246_v39, %v2122_v63 }
 0xb26   :  { %v2169_v57 = vmul.f32 1.442695, %v2153_v45 }
 0xb27   :  { %v2124_v38 = vpop.xlane.xlu0 %2123 }
 0xb28   :  { %v2154_v52 = vsub.f32 %v4251_v22, %v2124_v38  ;;  %3282 = vpow2.f32 %v2169_v57 }
 0xb2a   :  { %v2171_v30 = vmul.f32 1.442695, %v2154_v52 }
 0xb2b   :  { %v2126_v61 = vpop.xlane.xlu0 %2125 }
 0xb2c   :  { %3284 = vpow2.f32 %v2171_v30  ;;  %v2155_v5 = vsub.f32 %v4256_v3, %v2126_v61 }
 0xb2e   :  { %v2173_v4 = vmul.f32 1.442695, %v2155_v5 }
 0xb2f   :  { %v2128_v35 = vpop.xlane.xlu0 %2127 }
 0xb30   :  { %v2156_v10 = vsub.f32 %v4261_v16, %v2128_v35  ;;  %3286 = vpow2.f32 %v2173_v4 }
 0xb32   :  { %v2175_v12 = vmul.f32 1.442695, %v2156_v10  ;;  %v3283_v23 = vpop.eup %3282  ;;  %v3147_v10 = vld [vmem:[#allocation11 + $0x8] sm:$0xff]  }
 0xb33   :  { %v2130_v17 = vpop.xlane.xlu0 %2129 }
 0xb34   :  { %3288 = vpow2.f32 %v2175_v12  ;;  %v2157_v39 = vsub.f32 %v4266_v0, %v2130_v17  ;;  %v3149_v12 = vld [vmem:[#allocation11 + $0x18] sm:$0xff]   ;;  %v3150_v17 = vld [vmem:[#allocation11 + $0x20] sm:$0xff]  }
 0xb36   :  { %v3285_v41 = vpop.eup %3284  ;;  %v2177_v56 = vmul.f32 1.442695, %v2157_v39 }
 0xb37   :  { %v2132_v22 = vpop.xlane.xlu0 %2131  ;;  %v2201_v24 = vpack.c.bf16 %v3285_v41, %v3283_v23 }
 0xb38   :  { %v2158_v47 = vsub.f32 %v4271_v2, %v2132_v22  ;;  %3290 = vpow2.f32 %v2177_v56 }
 0xb39   :  { %3024 = vmatprep.mubr.bf16.mxu1 %v2201_v24 }
 0xb3a   :  { %v2179_v9 = vmul.f32 1.442695, %v2158_v47  ;;  %v3287_v37 = vpop.eup %3286  ;;  %v3151_v47 = vld [vmem:[#allocation11 + $0x28] sm:$0xff]  }
 0xb3b   :  { %v2134_v3 = vpop.xlane.xlu0 %2133 }
 0xb3c   :  { %3292 = vpow2.f32 %v2179_v9  ;;  %v2159_v16 = vsub.f32 %v4276_v31, %v2134_v3 }
 0xb3e   :  { %v3289_v36 = vpop.eup %3288  ;;  %v2181_v53 = vmul.f32 1.442695, %v2159_v16 }
 0xb3f   :  { %v2136_v33 = vpop.xlane.xlu0 %2135  ;;  %v2202_v48 = vpack.c.bf16 %v3289_v36, %v3287_v37 }
 0xb40   :  { %v2160_v0 = vsub.f32 %v4281_v59, %v2136_v33  ;;  %3294 = vpow2.f32 %v2181_v53  ;;  %v3152_v53 = vld [vmem:[#allocation11 + $0x30] sm:$0xff]  }
 0xb41   :  { %3025 = vmatmul.mubr.bf16.vlgmr.msra.gmra.mrb[32].mxu1 %v2202_v48  ;;  %v3153_v48 = vld [vmem:[#allocation11 + $0x38] sm:$0xff]  }
 0xb42   :  { %v2183_v27 = vmul.f32 1.442695, %v2160_v0  ;;  %v3291_v11 = vpop.eup %3290 }
 0xb43   :  { %v2138_v8 = vpop.xlane.xlu0 %2137 }
 0xb44   :  { %3296 = vpow2.f32 %v2183_v27  ;;  %v2161_v2 = vsub.f32 %v4286_v58, %v2138_v8 }
 0xb46   :  { %v3293_v44 = vpop.eup %3292  ;;  %v2185_v1 = vmul.f32 1.442695, %v2161_v2 }
 0xb47   :  { %v2140_v55 = vpop.xlane.xlu0 %2139  ;;  %v2203_v19 = vpack.c.bf16 %v3293_v44, %v3291_v11 }
 0xb48   :  { %v2162_v31 = vsub.f32 %v4291_v28, %v2140_v55  ;;  %3298 = vpow2.f32 %v2185_v1 }
 0xb49   :  { %3028 = vmatprep.mubr.bf16.mxu1 %v2203_v19 }
 0xb4a   :  { %v2187_v49 = vmul.f32 1.442695, %v2162_v31  ;;  %v3295_v18 = vpop.eup %3294 }
 0xb4b   :  { %v2142_v7 = vpop.xlane.xlu0 %2141 }
 0xb4c   :  { %3300 = vpow2.f32 %v2187_v49  ;;  %v2163_v59 = vsub.f32 %v4297_v20, %v2142_v7 }
 0xb4e   :  { %v3297_v29 = vpop.eup %3296  ;;  %v2189_v25 = vmul.f32 1.442695, %v2163_v59 }
 0xb4f   :  { %v2144_v60 = vpop.xlane.xlu0 %2143  ;;  %v2204_v54 = vpack.c.bf16 %v3297_v29, %v3295_v18 }
 0xb50   :  { %v2164_v58 = vsub.f32 %v4302_v26, %v2144_v60  ;;  %3302 = vpow2.f32 %v2189_v25 }
 0xb51   :  { %3029 = vmatmul.mubr.bf16.gmra.mrb[36].mxu1 %v2204_v54 }
 0xb52   :  { %v2191_v62 = vmul.f32 1.442695, %v2164_v58  ;;  %v3299_v50 = vpop.eup %3298 }
 0xb53   :  { %v2146_v13 = vpop.xlane.xlu0 %2145 }
 0xb54   :  { %3304 = vpow2.f32 %v2191_v62  ;;  %v2165_v28 = vsub.f32 %v4308_v46, %v2146_v13 }
 0xb56   :  { %v3301_v40 = vpop.eup %3300  ;;  %v2193_v34 = vmul.f32 1.442695, %v2165_v28 }
 0xb57   :  { %v2148_v15 = vpop.xlane.xlu0 %2147  ;;  %v2205_v14 = vpack.c.bf16 %v3301_v40, %v3299_v50  ;;  %v2687_v50 = vld [vmem:[%s4426_s8] ss:$0 sm:$0xff] }
 0xb58   :  { %v2166_v20 = vsub.f32 %v4313_v6, %v2148_v15  ;;  %3306 = vpow2.f32 %v2193_v34 }
 0xb59   :  { %3032 = vmatprep.mubr.bf16.mxu1 %v2205_v14 }
 0xb5a   :  { %v2195_v43 = vmul.f32 1.442695, %v2166_v20  ;;  %v3303_v21 = vpop.eup %3302 }
 0xb5b   :  { %v2150_v42 = vpop.xlane.xlu0 %2149 }
 0xb5c   :  { %3308 = vpow2.f32 %v2195_v43  ;;  %v2167_v26 = vsub.f32 %v4317_v32, %v2150_v42  ;;  %v3146_v32 = vld [vmem:[#allocation11] sm:$0xff]  }
 0xb5d   :  { %3040 = vmatprep.subr.bf16.mxu0 %v3146_v32  ;;  %3072 = vmatprep.subr.bf16.mxu1 %v3146_v32 }
 0xb5e   :  { %v3305_v63 = vpop.eup %3304  ;;  %v2197_v45 = vmul.f32 1.442695, %v2167_v26  ;;  %3041 = vmatpush3.bf16.msra.mxu0 %v3146_v32  ;;  %3080 = vmatpush3.bf16.msra.mxu1 %v3146_v32 }
 0xb5f   :  { %v2152_v57 = vpop.xlane.xlu0 %2151  ;;  %v2206_v38 = vpack.c.bf16 %v3305_v63, %v3303_v21  ;;  %3042 = vmatprep.subr.bf16.mxu0 %v3147_v10  ;;  %3073 = vmatprep.subr.bf16.mxu1 %v3147_v10 }
 0xb60   :  { %v2168_v46 = vsub.f32 %v4321_v51, %v2152_v57  ;;  %3310 = vpow2.f32 %v2197_v45  ;;  %v3148_v51 = vld [vmem:[#allocation11 + $0x10] sm:$0xff]  }
 0xb61   :  { %3033 = vmatmul.mubr.bf16.gmra.mrb[40].mxu1 %v2206_v38 }
 0xb62   :  { %v2199_v52 = vmul.f32 1.442695, %v2168_v46  ;;  %v3307_v30 = vpop.eup %3306  ;;  %3043 = vmatpush3.bf16.msra.mxu0 %v3147_v10  ;;  %3081 = vmatpush3.bf16.msra.mxu1 %v3147_v10 }
 0xb63   :  { %3044 = vmatprep.subr.bf16.mxu0 %v3148_v51  ;;  %3074 = vmatprep.subr.bf16.mxu1 %v3148_v51 }
 0xb64   :  { %3312 = vpow2.f32 %v2199_v52 }
 0xb66   :  { %v3309_v6 = vpop.eup %3308  ;;  %3045 = vmatpush3.bf16.msra.mxu0 %v3148_v51  ;;  %3082 = vmatpush3.bf16.msra.mxu1 %v3148_v51 }
 0xb67   :  { %v2207_v61 = vpack.c.bf16 %v3309_v6, %v3307_v30  ;;  %3046 = vmatprep.subr.bf16.mxu0 %v3149_v12  ;;  %3075 = vmatprep.subr.bf16.mxu1 %v3149_v12 }
 0xb69   :  { %3036 = vmatprep.mubr.bf16.mxu1 %v2207_v61 }
 0xb6a   :  { %v3311_v5 = vpop.eup %3310  ;;  %3047 = vmatpush3.bf16.msra.mxu0 %v3149_v12  ;;  %3083 = vmatpush3.bf16.msra.mxu1 %v3149_v12 }
 0xb6b   :  { %3048 = vmatprep.subr.bf16.mxu0 %v3150_v17  ;;  %3076 = vmatprep.subr.bf16.mxu1 %v3150_v17 }
 0xb6e   :  { %v3313_v4 = vpop.eup %3312  ;;  %3049 = vmatpush3.bf16.msra.mxu0 %v3150_v17  ;;  %3084 = vmatpush3.bf16.msra.mxu1 %v3150_v17 }
 0xb6f   :  { %v2208_v35 = vpack.c.bf16 %v3313_v4, %v3311_v5  ;;  %3050 = vmatprep.subr.bf16.mxu0 %v3151_v47  ;;  %3077 = vmatprep.subr.bf16.mxu1 %v3151_v47 }
 0xb71   :  { %3037 = vmatmul.mubr.bf16.gmra.mrb[44].mxu1 %v2208_v35 }
 0xb72   :  { %3051 = vmatpush3.bf16.msra.mxu0 %v3151_v47  ;;  %3085 = vmatpush3.bf16.msra.mxu1 %v3151_v47 }
 0xb73   :  { %3052 = vmatprep.subr.bf16.mxu0 %v3152_v53  ;;  %3078 = vmatprep.subr.bf16.mxu1 %v3152_v53 }
 0xb76   :  { %3053 = vmatpush3.bf16.msra.mxu0 %v3152_v53  ;;  %3086 = vmatpush3.bf16.msra.mxu1 %v3152_v53 }
 0xb77   :  { %3054 = vmatprep.subr.bf16.mxu0 %v3153_v48  ;;  %3079 = vmatprep.subr.bf16.mxu1 %v3153_v48 }
 0xb7a   :  { %3055 = vmatpush3.bf16.msra.mxu0 %v3153_v48  ;;  %3087 = vmatpush3.bf16.msra.mxu1 %v3153_v48 }
 0xc14   :  { %v4340_v39 = vpop.f32.mrb[32].mxu1 }
 0xc15   :  { %3314 = vrcp.f32 %v4340_v39  ;;  %v4343_v23 = vpop.f32.mrb[33].mxu1 }
 0xc16   :  { %v4345_v41 = vpop.f32.mrb[34].mxu1 }
 0xc17   :  { %3316 = vrcp.f32 %v4345_v41  ;;  %v4348_v56 = vpop.f32.mrb[35].mxu1 }
 0xc18   :  { %3318 = vrcp.f32 %v4343_v23 }
 0xc19   :  { %3320 = vrcp.f32 %v4348_v56 }
 0xc1f   :  { %v3315_v22 = vpop.eup %3314 }
 0xc20   :  { %2334 = vperm.xlu0 %3112, %v3315_v22  }
 0xc21   :  { %v3317_v24 = vpop.eup %3316 }
 0xc22   :  { %2339 = vperm.xlu1 %3113, %v3317_v24   ;;  %v3319_v9 = vpop.eup %3318 }
 0xc23   :  { %v3321_v16 = vpop.eup %3320 }
 0xc24   :  { %2324 = vperm.xlu0 %3112, %v3319_v9   ;;  %v4352_v3 = vpop.f32.mrb[36].mxu1 }
 0xc25   :  { %3322 = vrcp.f32 %v4352_v3  ;;  %v4355_v37 = vpop.f32.mrb[37].mxu1 }
 0xc26   :  { %2329 = vperm.xlu1 %3113, %v3321_v16   ;;  %v4357_v36 = vpop.f32.mrb[38].mxu1 }
 0xc27   :  { %v4359_v33 = vpop.f32.mrb[39].mxu1 }
 0xc28   :  { %3324 = vrcp.f32 %v4359_v33 }
 0xc29   :  { %3326 = vrcp.f32 %v4355_v37 }
 0xc2f   :  { %v3323_v0 = vpop.eup %3322 }
 0xc30   :  { %2354 = vperm.xlu0 %3112, %v3323_v0  }
 0xc32   :  { %v3325_v27 = vpop.eup %3324 }
 0xc33   :  { %v3327_v8 = vpop.eup %3326  ;;  %2349 = vperm.xlu1 %3113, %v3325_v27  }
 0xc34   :  { %2344 = vperm.xlu0 %3112, %v3327_v8   ;;  %v4363_v2 = vpop.f32.mrb[40].mxu1 }
 0xc35   :  { %3328 = vrcp.f32 %v4363_v2  ;;  %v4366_v11 = vpop.f32.mrb[41].mxu1 }
 0xc36   :  { %3330 = vrcp.f32 %v4366_v11  ;;  %v3035_v44 = vpop.f32.mrb[42].mxu1 }
 0xc37   :  { %v4369_v1 = vpop.f32.mrb[43].mxu1  ;;  %3332 = vrcp.f32 %v3035_v44 }
 0xc38   :  { %3334 = vrcp.f32 %v4369_v1 }
 0xc39   :  { %3336 = vrcp.f32 %v4357_v36 }
 0xc3f   :  { %v3329_v55 = vpop.eup %3328 }
 0xc40   :  { %v3331_v19 = vpop.eup %3330  ;;  %2374 = vperm.xlu0 %3112, %v3329_v55  }
 0xc41   :  { %2364 = vperm.xlu1 %3113, %v3331_v19   ;;  %v3333_v31 = vpop.eup %3332 }
 0xc42   :  { %v3335_v29 = vpop.eup %3334 }
 0xc43   :  { %v3337_v25 = vpop.eup %3336 }
 0xc44   :  { %v4373_v49 = vpop.f32.mrb[44].mxu1 }
 0xc45   :  { %2379 = vperm.xlu1 %3113, %v3333_v31   ;;  %v4375_v7 = vpop.f32.mrb[45].mxu1 }
 0xc46   :  { %3338 = vrcp.f32 %v4375_v7  ;;  %v4378_v59 = vpop.f32.mrb[46].mxu1 }
 0xc47   :  { %v4380_v18 = vpop.f32.mrb[47].mxu1 }
 0xc48   :  { %3340 = vrcp.f32 %v4380_v18 }
 0xc49   :  { %2369 = vperm.xlu1 %3113, %v3335_v29   ;;  %3342 = vrcp.f32 %v4373_v49 }
 0xc4a   :  { %3344 = vrcp.f32 %v4378_v59 }
 0xc4d   :  { %2359 = vperm.xlu1 %3113, %v3337_v25  }
 0xc50   :  { %v3339_v60 = vpop.eup %3338 }
 0xc51   :  { %2384 = vperm.xlu0 %3112, %v3339_v60  }
 0xc52   :  { %v3341_v54 = vpop.eup %3340 }
 0xc53   :  { %2389 = vperm.xlu1 %3113, %v3341_v54   ;;  %v3343_v58 = vpop.eup %3342 }
 0xc54   :  { %v3345_v62 = vpop.eup %3344 }
 0xc55   :  { %2394 = vperm.xlu0 %3112, %v3343_v58  }
 0xc57   :  { %2399 = vperm.xlu1 %3113, %v3345_v62  }
 0xc9f   :  { %v2335_v13 = vpop.permute.xlu0 %2334 }
 0xca0   :  { %v2404_v28 = vmul.f32 %v4340_v39, %v2335_v13 }
 0xca1   :  { %v2340_v40 = vpop.permute.xlu1 %2339 }
 0xca2   :  { %v2405_v34 = vmul.f32 %v4345_v41, %v2340_v40  ;;  %v2426_v14 = vadd.f32 %v2687_v50, %v2404_v28 }
 0xca3   :  { %v2325_v15 = vpop.permute.xlu0 %2324 }
 0xca4   :  { %v2427_v20 = vadd.f32 %v2687_v50, %v2405_v34  ;;  %v2402_v43 = vmul.f32 %v2325_v15, %v4343_v23 }
 0xca5   :  { %v2330_v42 = vpop.permute.xlu1 %2329 }
 0xca6   :  { %v2441_v26 = vpack.c.bf16 %v2427_v20, %v2426_v14  ;;  %v2403_v21 = vmul.f32 %v2330_v42, %v4348_v56  ;;  %v2424_v63 = vadd.f32 %v2687_v50, %v2402_v43 }
 0xca8   :  { %v2425_v45 = vadd.f32 %v2687_v50, %v2403_v21 }
 0xcaa   :  { %v2440_v57 = vpack.c.bf16 %v2425_v45, %v2424_v63 }
 0xcac   :  { %3056 = vmatprep.mubr.bf16.mxu0 %v2440_v57 }
 0xcad   :  { %3057 = vmatmul.mubr.bf16.vlgmr.msra.gmra.mrb[48].mxu0 %v2441_v26 }
 0xcaf   :  { %v2355_v38 = vpop.permute.xlu0 %2354 }
 0xcb0   :  { %v2408_v24 = vmul.f32 %v4352_v3, %v2355_v38 }
 0xcb2   :  { %v2350_v46 = vpop.permute.xlu1 %2349 }
 0xcb3   :  { %v2407_v52 = vmul.f32 %v2350_v46, %v4359_v33  ;;  %v2345_v30 = vpop.permute.xlu0 %2344  ;;  %v2430_v33 = vadd.f32 %v2687_v50, %v2408_v24 }
 0xcb4   :  { %v2406_v6 = vmul.f32 %v2345_v30, %v4355_v37 }
 0xcb5   :  { %v2429_v61 = vadd.f32 %v2687_v50, %v2407_v52 }
 0xcb6   :  { %v2428_v5 = vadd.f32 %v2687_v50, %v2406_v6 }
 0xcb8   :  { %v2442_v4 = vpack.c.bf16 %v2429_v61, %v2428_v5 }
 0xcba   :  { %3060 = vmatprep.mubr.bf16.mxu0 %v2442_v4 }
 0xcbf   :  { %v2375_v35 = vpop.permute.xlu0 %2374 }
 0xcc0   :  { %v2365_v32 = vpop.permute.xlu1 %2364  ;;  %v2412_v10 = vmul.f32 %v4363_v2, %v2375_v35 }
 0xcc1   :  { %v2410_v39 = vmul.f32 %v2365_v32, %v4366_v11 }
 0xcc2   :  { %v2434_v17 = vadd.f32 %v2687_v50, %v2412_v10 }
 0xcc3   :  { %v2432_v47 = vadd.f32 %v2687_v50, %v2410_v39 }
 0xcc4   :  { %v2380_v51 = vpop.permute.xlu1 %2379 }
 0xcc5   :  { %v2413_v12 = vmul.f32 %v3035_v44, %v2380_v51 }
 0xcc7   :  { %v2435_v23 = vadd.f32 %v2687_v50, %v2413_v12 }
 0xcc8   :  { %v2370_v41 = vpop.permute.xlu1 %2369 }
 0xcc9   :  { %v2445_v56 = vpack.c.bf16 %v2435_v23, %v2434_v17  ;;  %v2411_v22 = vmul.f32 %v2370_v41, %v4369_v1 }
 0xccb   :  { %v2433_v9 = vadd.f32 %v2687_v50, %v2411_v22 }
 0xccc   :  { %v2360_v16 = vpop.permute.xlu1 %2359 }
 0xccd   :  { %v2409_v37 = vmul.f32 %v4357_v36, %v2360_v16  ;;  %v2444_v53 = vpack.c.bf16 %v2433_v9, %v2432_v47 }
 0xccf   :  { %v2431_v48 = vadd.f32 %v2687_v50, %v2409_v37  ;;  %3064 = vmatprep.mubr.bf16.mxu1 %v2444_v53 }
 0xcd0   :  { %3065 = vmatmul.mubr.bf16.vlgmr.msra.gmra.mrb[48].mxu1 %v2445_v56  ;;  %v2385_v0 = vpop.permute.xlu0 %2384 }
 0xcd1   :  { %v2414_v27 = vmul.f32 %v2385_v0, %v4375_v7  ;;  %v2443_v8 = vpack.c.bf16 %v2431_v48, %v2430_v33  ;;  %v2688_v7 = vld [vmem:[%s4428_s10] ss:$0 sm:$0xff]  ;;  %s3523_s10 = smov [#allocation13]  }
 0xcd2   :  { %v2390_v2 = vpop.permute.xlu1 %2389  ;;  %s2637_s22 = sshll.u32 %s3523_s10, 4  ;;  %s2638_s22 = int_to_ptr.vmem [resolvable:$true] %s2637_s22 }
 0xcd3   :  { %v2415_v11 = vmul.f32 %v2390_v2, %v4380_v18  ;;  %3061 = vmatmul.mubr.bf16.gmra.mrb[52].mxu0 %v2443_v8  ;;  %v2436_v3 = vadd.f32 %v2687_v50, %v2414_v27  ;;  %s3480_s3 = scalar_lea.vmem %s2638_s22, 2048  ;;  %p3485_p7 = scmp.lt.s32.totalorder %s2638_s22, %s2638_s22 }
 0xcd4   :  { %v2395_v44 = vpop.permute.xlu0 %2394  ;;  %p3481_p6 = scmp.ne.s32.totalorder %s2638_s22, %s3480_s3  ;;  %p3486_p8 = scmp.lt.s32.totalorder %s3480_s3, %s3480_s3 }
 0xcd5   :  { %v2437_v1 = vadd.f32 %v2687_v50, %v2415_v11  ;;  %v2416_v55 = vmul.f32 %v4373_v49, %v2395_v44 }
 0xcd6   :  { %v2400_v19 = vpop.permute.xlu1 %2399  ;;  %p3487_p9 = por %p3486_p8, %p3485_p7 }
 0xcd7   :  { %v2417_v36 = vmul.f32 %v4378_v59, %v2400_v19  ;;  %v2446_v31 = vpack.c.bf16 %v2437_v1, %v2436_v3  ;;  %v2438_v29 = vadd.f32 %v2687_v50, %v2416_v55 }
 0xcd8   :  { %p3488_p10 = pnand %p3487_p9, %p3481_p6 }
 0xcd9   :  { %v2439_v25 = vadd.f32 %v2687_v50, %v2417_v36  ;;  %3068 = vmatprep.mubr.bf16.mxu1 %v2446_v31 }
 0xcdb   :  { %v2447_v60 = vpack.c.bf16 %v2439_v25, %v2438_v29 }
 0xcdd   :  { %3069 = vmatmul.mubr.bf16.gmra.mrb[52].mxu1 %v2447_v60 }
 0xd80   :  { %v3058_v18 = vpop.f32.mrb[48].mxu0 }
 0xd81   :  { %v2562_v54 = vadd.f32 %v3058_v18, %v2688_v7  ;;  %v2553_v58 = vpop.f32.mrb[49].mxu0 }
 0xd82   :  { %v2554_v62 = vadd.f32 %v2688_v7, %v2553_v58  ;;  %v3059_v13 = vpop.f32.mrb[50].mxu0 }
 0xd83   :  { %2618 = vst [vmem:[#allocation13 + $0x10] sm:$0xff] %v2562_v54  ;;  %v2565_v49 = vadd.f32 %v3059_v13, %v2688_v7  ;;  %v2556_v28 = vpop.f32.mrb[51].mxu0 }
 0xd84   :  { %2616 = vst [vmem:[#allocation13] sm:$0xff] %v2554_v62  ;;  %v2557_v59 = vadd.f32 %v2688_v7, %v2556_v28 }
 0xd85   :  { %2619 = vst [vmem:[#allocation13 + $0x18] sm:$0xff] %v2565_v49 }
 0xd86   :  { %2617 = vst [vmem:[#allocation13 + $0x8] sm:$0xff] %v2557_v59 }
 0xda3   :  { %v3066_v50 = vpop.f32.mrb[48].mxu1 }
 0xda4   :  { %v2594_v40 = vadd.f32 %v3066_v50, %v2688_v7  ;;  %v2585_v34 = vpop.f32.mrb[49].mxu1 }
 0xda5   :  { %v2586_v15 = vadd.f32 %v2688_v7, %v2585_v34  ;;  %v3067_v14 = vpop.f32.mrb[50].mxu1 }
 0xda6   :  { %2626 = vst [vmem:[#allocation13 + $0x50] sm:$0xff] %v2594_v40  ;;  %v2597_v20 = vadd.f32 %v3067_v14, %v2688_v7  ;;  %v3062_v43 = vpop.f32.mrb[52].mxu0  ;;  %v2588_v42 = vpop.f32.mrb[51].mxu1 }
 0xda7   :  { %2624 = vst [vmem:[#allocation13 + $0x40] sm:$0xff] %v2586_v15  ;;  %v2578_v26 = vadd.f32 %v3062_v43, %v2688_v7  ;;  %v2589_v21 = vadd.f32 %v2688_v7, %v2588_v42  ;;  %v2569_v63 = vpop.f32.mrb[53].mxu0 }
 0xda8   :  { %2627 = vst [vmem:[#allocation13 + $0x58] sm:$0xff] %v2597_v20  ;;  %v2570_v45 = vadd.f32 %v2688_v7, %v2569_v63  ;;  %v3063_v57 = vpop.f32.mrb[54].mxu0 }
 0xda9   :  { %2622 = vst [vmem:[#allocation13 + $0x30] sm:$0xff] %v2578_v26  ;;  %2625 = vst [vmem:[#allocation13 + $0x48] sm:$0xff] %v2589_v21  ;;  %v2581_v38 = vadd.f32 %v3063_v57, %v2688_v7  ;;  %v2572_v46 = vpop.f32.mrb[55].mxu0 }
 0xdaa   :  { %2620 = vst [vmem:[#allocation13 + $0x20] sm:$0xff] %v2570_v45  ;;  %v2573_v52 = vadd.f32 %v2688_v7, %v2572_v46 }
 0xdab   :  { %2623 = vst [vmem:[#allocation13 + $0x38] sm:$0xff] %v2581_v38 }
 0xdac   :  { %2621 = vst [vmem:[#allocation13 + $0x28] sm:$0xff] %v2573_v52 }
 0xdb0   :  { %v3070_v30 = vpop.f32.mrb[52].mxu1 }
 0xdb1   :  { %v2610_v6 = vadd.f32 %v3070_v30, %v2688_v7  ;;  %v2601_v61 = vpop.f32.mrb[53].mxu1 }
 0xdb2   :  { %v2602_v5 = vadd.f32 %v2688_v7, %v2601_v61  ;;  %v3071_v4 = vpop.f32.mrb[54].mxu1 }
 0xdb3   :  { %2630 = vst [vmem:[#allocation13 + $0x70] sm:$0xff] %v2610_v6  ;;  %v2613_v35 = vadd.f32 %v3071_v4, %v2688_v7  ;;  %v2604_v32 = vpop.f32.mrb[55].mxu1 }
 0xdb4   :  { %2628 = vst [vmem:[#allocation13 + $0x60] sm:$0xff] %v2602_v5  ;;  %v2605_v10 = vadd.f32 %v2688_v7, %v2604_v32 }
 0xdb5   :  { %2631 = vst [vmem:[#allocation13 + $0x78] sm:$0xff] %v2613_v35 }
 0xdb6   :  { %2629 = vst [vmem:[#allocation13 + $0x68] sm:$0xff] %v2605_v10 }
 0xdb7   :  { %3491 = shalt.err (!%p3488_p10)
}
 0xdb8   :  { %s3492_s1 = scalar_lea.hbm %s4429_s11, 2048 }
 0xdb9   :  { %p3493_p11 = scmp.ne.s32.totalorder %s4429_s11, %s3492_s1  ;;  %p3496_p12 = scmp.lt.u32.totalorder %s3492_s1, %s4429_s11 }
 0xdbb   :  { %p3498_p13 = pnand %p3496_p12, %p3493_p11 }
 0xdbd   :  { %3501 = shalt.err (!%p3498_p13)
}
 0xdbe   :  { %s3524_s0 = smov 128   ;;  %s3525_s25 = smov 8  }
 0xdbf   :  { %2643 = dma.vmem_to_hbm [thread:$0]  %s2638_s22, 2048, %s4429_s11, [#allocation4], %s3524_s0, %s3524_s0, %s3525_s25  }
 0xdc0   :  { %3510 = dma.done.wait [#allocation4], 2048  }
 0xdc1   :  { %3511 = vsyncadd [#allocation4], 4294965248 }
 0xdc2   :  { %2647 = vsyncpa [#allocation3], 1 }
 0xdc3   :  { %2648 = vsyncpa [#allocation6], 1 }
 0xdc4   :  { %2649 = vsyncpa [#allocation9], 1 }
 0xdc5   :  { %2650 = vsyncpa [#allocation12], 1 }
 0xdc6   :  { %2651 = vsyncpa [#allocation4], 1 }

</bundles_post_ra>
